<compile_context>
chip_gen: v7x
topology: tpu7x:2x2x1
jax: 0.10.0
libtpu: 0.0.40
codegen_flags: <defaults>
</compile_context>

<pallas_src>
import jax
import jax.numpy as jnp
from jax.experimental import pallas as pl
from jax.experimental.pallas import tpu as pltpu

LANE = 128


def _round_up(n, m):
    return ((n + m - 1) // m) * m


# --------------------------------------------------------------------------
# Kernel 1: 6-layer weighted-GCN stack + global mean pool for one GROUP of
# K fused siamese pairs (2K graphs, block-diagonal A / P).
# --------------------------------------------------------------------------
def gcn_group_kernel(a_ref, p_ref, x_ref, gw1_ref, gwr_ref, gb_ref, g_ref):
    bf16 = jnp.bfloat16
    A = a_ref[0]                       # (R, R) bf16 block-diag normalized adjacency
    Hp = gw1_ref.shape[1]              # padded hidden width (128)
    gb = gb_ref[...]                   # (6, Hp) f32 biases

    def gcn(h_bf16, w_bf16, b_row):
        # GCNConv with edge weights: A_hat @ (h @ W) + b  (bf16 MXU, f32 accum)
        hw = jnp.dot(h_bf16, w_bf16, preferred_element_type=jnp.float32)
        return jnp.dot(A, hw.astype(bf16),
                       preferred_element_type=jnp.float32) + b_row

    h = x_ref[0]                                                         # (R, Cp) bf16
    h = jnp.tanh(gcn(h, gw1_ref[...],              gb[0:1, :])).astype(bf16)  # conv1
    h = jnp.tanh(gcn(h, gwr_ref[0:Hp, :],          gb[1:2, :])).astype(bf16)  # conv2
    h =          gcn(h, gwr_ref[Hp:2 * Hp, :],     gb[2:3, :]).astype(bf16)   # conv3 (no act)
    h = jnp.tanh(gcn(h, gwr_ref[2 * Hp:3 * Hp, :], gb[3:4, :])).astype(bf16)  # conv4
    h = jnp.tanh(gcn(h, gwr_ref[3 * Hp:4 * Hp, :], gb[4:5, :])).astype(bf16)  # conv5
    h = jnp.tanh(gcn(h, gwr_ref[4 * Hp:5 * Hp, :], gb[5:6, :])).astype(bf16)  # conv6

    # global_mean_pool for all 2K graphs of the group at once -> (rows, Hp)
    g_ref[0] = jnp.dot(p_ref[0], h, preferred_element_type=jnp.float32)


# --------------------------------------------------------------------------
# Kernel 2: 6-layer shared FC chain (ReLU) on ALL pooled embeddings at once.
# --------------------------------------------------------------------------
def fc_chain_kernel(g_ref, fw1_ref, fwr_ref, fb_ref, y_ref):
    bf16 = jnp.bfloat16
    Op = fw1_ref.shape[1]
    fb = fb_ref[...]                   # (6, Op) f32
    y = jnp.maximum(
        jnp.dot(g_ref[...].astype(bf16), fw1_ref[...],
                preferred_element_type=jnp.float32) + fb[0:1, :], 0.0)
    for i in range(5):
        w = fwr_ref[i * Op:(i + 1) * Op, :]
        y = jnp.maximum(
            jnp.dot(y.astype(bf16), w,
                    preferred_element_type=jnp.float32) + fb[i + 1:i + 2, :], 0.0)
    y_ref[...] = y                     # lane-dense (M, Op) f32 slab


# --------------------------------------------------------------------------
# Wrapper: grouped GCN pallas_call + batched FC pallas_call + tiny L2 in JAX.
# --------------------------------------------------------------------------
def siamese_gnn_pallas(A, P, X, padded_params, n_graphs, n_pairs, pairs_per_group):
    """A: (ngrp, R, R) bf16, P: (ngrp, rows, R) bf16, X: (ngrp, R, Cp) bf16."""
    gw1p, gwrp, gbp, fw1p, fwrp, fbp = padded_params
    ngrp, R, _ = A.shape
    rows = P.shape[1]                  # pooled rows per group (K*2G, sublane padded)
    Cp = X.shape[2]
    Hp = gw1p.shape[1]
    Op = fw1p.shape[1]

    def grp_spec(shape):
        return pl.BlockSpec((1,) + shape, lambda b: (b, 0, 0))

    def const_spec(arr):
        # Constant index_map -> the weight block stays VMEM-resident across grid.
        # TODO(synk): pipeline_mode=pl.Buffered(1) here would halve the weight
        # VMEM footprint once hidden/out widths grow (matters on v7x's 64 MiB).
        return pl.BlockSpec(arr.shape, lambda b: (0,) * arr.ndim)

    # TODO(synk): for large N, row-tile the A @ (hW) product (BlockSpec (tm, 2N)
    # on A or manual double-buffered DMA) instead of materializing the dense
    # block-diagonal adjacency in VMEM, and drop the cross-branch block-diag
    # (keep branches stacked only for the shared-weight h@W matmul).
    g = pl.pallas_call(
        gcn_group_kernel,
        out_shape=jax.ShapeDtypeStruct((ngrp, rows, Hp), jnp.float32),
        grid=(ngrp,),
        in_specs=[
            grp_spec((R, R)),                  # block-diag adjacency (K pairs)
            grp_spec((rows, R)),               # block-diag mean-pool matrix
            grp_spec((R, Cp)),                 # stacked node features
            const_spec(gw1p), const_spec(gwrp), const_spec(gbp),
        ],
        out_specs=grp_spec((rows, Hp)),
        compiler_params=pltpu.CompilerParams(
            dimension_semantics=("parallel",),
            vmem_limit_bytes=16 * 1024 * 1024),
    )(A, P, X, gw1p, gwrp, gbp)

    # FC chain hoisted out of the per-group body: one call on every pooled row.
    g_flat = g.reshape(ngrp * rows, Hp)

    def full_spec(arr):
        return pl.BlockSpec(arr.shape, lambda i: (0,) * arr.ndim)

    y = pl.pallas_call(
        fc_chain_kernel,
        out_shape=jax.ShapeDtypeStruct((ngrp * rows, Op), jnp.float32),
        grid=(1,),
        in_specs=[full_spec(g_flat), full_spec(fw1p), full_spec(fwrp),
                  full_spec(fbp)],
        out_specs=pl.BlockSpec((ngrp * rows, Op), lambda i: (0, 0)),
        compiler_params=pltpu.CompilerParams(
            dimension_semantics=("arbitrary",),
            vmem_limit_bytes=16 * 1024 * 1024),
    )(g_flat, fw1p, fwrp, fbp)

    # Undo grouping / padding and compute the pairwise L2 distance.
    K, G = pairs_per_group, n_graphs
    y = y.reshape(ngrp, rows, Op)[:, :K * 2 * G, :]      # drop padded pool rows
    y = y.reshape(n_pairs, 2, G, Op)                     # (pair, branch, graph, Op)
    d = y[:, 0] - y[:, 1]                                # padded lanes are exactly 0
    return jnp.sqrt(jnp.sum(d * d, axis=-1))             # (B, G), matches torch.norm


# --------------------------------------------------------------------------
# Plain-JAX glue: preprocessing, grouping, padding, parameter init, reference.
# --------------------------------------------------------------------------
def gcn_norm_dense(edge_index, edge_weight, n):
    """Dense symmetric-normalized adjacency with self loops (PyG gcn_norm)."""
    A = jnp.zeros((n, n), jnp.float32)
    A = A.at[edge_index[1], edge_index[0]].add(edge_weight)  # rows=dst, cols=src
    A = A + jnp.eye(n, dtype=jnp.float32)                    # self loops (weight 1)
    deg = A.sum(axis=1)
    dinv = jnp.where(deg > 0, 1.0 / jnp.sqrt(deg), 0.0)
    return dinv[:, None] * A * dinv[None, :]


def pool_matrix(batch, n_graphs, n):
    onehot = (batch[None, :] == jnp.arange(n_graphs)[:, None]).astype(jnp.float32)
    counts = jnp.maximum(onehot.sum(axis=1, keepdims=True), 1.0)
    return onehot / counts  # (G, N)


def fuse_pairs(raw_pairs, pairs_per_group, lane=LANE):
    """Fuse K siamese pairs per group: block-diag A / P over the 2K graphs and
    stacked, lane-padded node features (all bf16)."""
    B = len(raw_pairs)
    K = pairs_per_group
    assert B % K == 0
    n = raw_pairs[0][0].shape[0]
    g = raw_pairs[0][1].shape[0]
    c = raw_pairs[0][2].shape[1]
    cp = _round_up(c, lane)
    R = _round_up(2 * K * n, 8)         # node rows per group (sublane aligned)
    rows = _round_up(2 * K * g, 8)      # pooled rows per group (sublane aligned)
    A_list, P_list, X_list = [], [], []
    for grp in range(B // K):
        A = jnp.zeros((R, R), jnp.float32)
        P = jnp.zeros((rows, R), jnp.float32)
        X = jnp.zeros((R, cp), jnp.float32)
        for j in range(K):
            a1, p1, x1, a2, p2, x2 = raw_pairs[grp * K + j]
            for s, (a, p, x) in enumerate(((a1, p1, x1), (a2, p2, x2))):
                r0 = (2 * j + s) * n
                q0 = (2 * j + s) * g
                A = A.at[r0:r0 + n, r0:r0 + n].set(a)
                P = P.at[q0:q0 + g, r0:r0 + n].set(p)
                X = X.at[r0:r0 + n, :c].set(x)
        A_list.append(A), P_list.append(P), X_list.append(X)
    bf16 = jnp.bfloat16
    return (jnp.stack(A_list).astype(bf16),
            jnp.stack(P_list).astype(bf16),
            jnp.stack(X_list).astype(bf16))


def init_params(key, in_ch, hid, out):
    ks = jax.random.split(key, 4)

    def glorot(k, shape):
        lim = (6.0 / (shape[-2] + shape[-1])) ** 0.5
        return jax.random.uniform(k, shape, jnp.float32, -lim, lim)

    gw1 = glorot(ks[0], (in_ch, hid))
    gwr = glorot(ks[1], (5, hid, hid))
    gb = jnp.zeros((6, hid), jnp.float32)
    fw1 = glorot(ks[2], (hid, out))
    fwr = glorot(ks[3], (5, out, out))
    fb = jnp.zeros((6, out), jnp.float32)
    return gw1, gwr, gb, fw1, fwr, fb


def pad_params(params, lane=LANE):
    """Zero-pad feature dims to 128 lanes, flatten stacked weights to lane-dense
    2-D slabs and pre-cast matmul weights to bf16 (biases stay f32)."""
    gw1, gwr, gb, fw1, fwr, fb = params
    C, H = gw1.shape
    O = fw1.shape[1]
    Cp, Hp, Op = _round_up(C, lane), _round_up(H, lane), _round_up(O, lane)
    bf16 = jnp.bfloat16
    gw1p = jnp.pad(gw1, ((0, Cp - C), (0, Hp - H))).astype(bf16)
    gwrp = jnp.pad(gwr, ((0, 0), (0, Hp - H), (0, Hp - H))).reshape(5 * Hp, Hp).astype(bf16)
    gbp = jnp.pad(gb, ((0, 0), (0, Hp - H)))
    fw1p = jnp.pad(fw1, ((0, Hp - H), (0, Op - O))).astype(bf16)
    fwrp = jnp.pad(fwr, ((0, 0), (0, Op - O), (0, Op - O))).reshape(5 * Op, Op).astype(bf16)
    fbp = jnp.pad(fb, ((0, 0), (0, Op - O)))
    return gw1p, gwrp, gbp, fw1p, fwrp, fbp


def reference_pair(a1, p1, x1, a2, p2, x2, params):
    """Pure-JAX reference with the same bf16-operand / f32-accumulate policy."""
    gw1, gwr, gb, fw1, fwr, fb = params
    bf16 = jnp.bfloat16

    def dot(a, b):
        return jnp.dot(a.astype(bf16), b.astype(bf16),
                       preferred_element_type=jnp.float32)

    def gcn(A, h, W, b):
        return dot(A, dot(h, W)) + b

    def branch(A, P, X):
        h = jnp.tanh(gcn(A, X, gw1, gb[0]))
        h = jnp.tanh(gcn(A, h, gwr[0], gb[1]))
        h =          gcn(A, h, gwr[1], gb[2])
        h = jnp.tanh(gcn(A, h, gwr[2], gb[3]))
        h = jnp.tanh(gcn(A, h, gwr[3], gb[4]))
        h = jnp.tanh(gcn(A, h, gwr[4], gb[5]))
        g = dot(P, h)
        y = jnp.maximum(dot(g, fw1) + fb[0], 0.0)
        for i in range(5):
            y = jnp.maximum(dot(y, fwr[i]) + fb[i + 1], 0.0)
        return y

    d = branch(a1, p1, x1) - branch(a2, p2, x2)
    return jnp.sqrt(jnp.sum(d * d, axis=-1))


# --------------------------------------------------------------------------
if __name__ == "__main__":
    key = jax.random.PRNGKey(0)
    in_ch, hid, out_ch = 8, 32, 16
    N, G, E = 16, 2, 40       # 16 nodes / 2 graphs per branch, 40 edges
    B, K = 8, 4               # 8 siamese pairs, 4 pairs per grid step -> grid=(2,)

    k_par, k_data = jax.random.split(key)
    params = init_params(k_par, in_ch, hid, out_ch)
    padded_params = pad_params(params)

    batch_assign = jnp.concatenate([jnp.zeros(N // 2, jnp.int32),
                                    jnp.ones(N // 2, jnp.int32)])

    raw_pairs = []
    for kp in jax.random.split(k_data, B):
        k1, k2, k3, k4, k5, k6 = jax.random.split(kp, 6)
        x1 = jax.random.normal(k1, (N, in_ch), jnp.float32)
        ei1 = jax.random.randint(k2, (2, E), 0, N, jnp.int32)
        ew1 = jax.random.uniform(k3, (E,), jnp.float32, 0.1, 1.0)
        x2 = jax.random.normal(k4, (N, in_ch), jnp.float32)
        ei2 = jax.random.randint(k5, (2, E), 0, N, jnp.int32)
        ew2 = jax.random.uniform(k6, (E,), jnp.float32, 0.1, 1.0)

        a1 = gcn_norm_dense(ei1, ew1, N)
        a2 = gcn_norm_dense(ei2, ew2, N)
        p = pool_matrix(batch_assign, G, N)
        raw_pairs.append((a1, p, x1, a2, p, x2))

    A, P, X = fuse_pairs(raw_pairs, K)   # (2,128,128), (2,16,128), (2,128,128) bf16

    out = siamese_gnn_pallas(A, P, X, padded_params,
                             n_graphs=G, n_pairs=B, pairs_per_group=K)   # (B, G)
    out = jax.block_until_ready(out)

    ref = jnp.stack([reference_pair(*rp, params) for rp in raw_pairs])   # (B, G)
    assert out.shape == (B, G)
    assert jnp.allclose(out, ref, rtol=2e-2, atol=2e-2), (out, ref)

    print("KERNEL_OK")
</pallas_src>

<mosaic_0001>
module attributes {stable_mosaic.version = 11 : i64} {
  func.func @gcn_group_kernel(%arg0: i32, %arg1: memref<1x128x128xbf16, #tpu.memory_space<vmem>>, %arg2: memref<1x16x128xbf16, #tpu.memory_space<vmem>>, %arg3: memref<1x128x128xbf16, #tpu.memory_space<vmem>>, %arg4: memref<128x128xbf16, #tpu.memory_space<vmem>>, %arg5: memref<640x128xbf16, #tpu.memory_space<vmem>>, %arg6: memref<6x128xf32, #tpu.memory_space<vmem>>, %arg7: memref<1x16x128xf32, #tpu.memory_space<vmem>>) attributes {dimension_semantics = [#tpu.dimension_semantics<parallel>], iteration_bounds = array<i64: 2>, scalar_prefetch = 0 : i64, scratch_operands = 0 : i64, tpu.core_type = #tpu.core_type<tc>, window_params = [{transform_indices = @transform_0, window_bounds = array<i64: 1, 128, 128>}, {transform_indices = @transform_1, window_bounds = array<i64: 1, 16, 128>}, {transform_indices = @transform_2, window_bounds = array<i64: 1, 128, 128>}, {pipeline_mode = #tpu.pipeline_mode<synchronous>, transform_indices = @transform_3, window_bounds = array<i64: 128, 128>}, {pipeline_mode = #tpu.pipeline_mode<synchronous>, transform_indices = @transform_4, window_bounds = array<i64: 640, 128>}, {pipeline_mode = #tpu.pipeline_mode<synchronous>, transform_indices = @transform_5, window_bounds = array<i64: 6, 128>}, {transform_indices = @transform_6, window_bounds = array<i64: 1, 16, 128>}]} {
    %c0 = arith.constant 0 : index
    %c0_0 = arith.constant 0 : index
    %c0_1 = arith.constant 0 : index
    %0 = vector.load %arg1[%c0, %c0_0, %c0_1] : memref<1x128x128xbf16, #tpu.memory_space<vmem>>, vector<1x128x128xbf16>
    %1 = vector.shape_cast %0 : vector<1x128x128xbf16> to vector<128x128xbf16>
    %c0_2 = arith.constant 0 : index
    %c0_3 = arith.constant 0 : index
    %2 = vector.load %arg6[%c0_2, %c0_3] : memref<6x128xf32, #tpu.memory_space<vmem>>, vector<6x128xf32>
    %c0_4 = arith.constant 0 : index
    %c0_5 = arith.constant 0 : index
    %c0_6 = arith.constant 0 : index
    %3 = vector.load %arg3[%c0_4, %c0_5, %c0_6] : memref<1x128x128xbf16, #tpu.memory_space<vmem>>, vector<1x128x128xbf16>
    %4 = vector.shape_cast %3 : vector<1x128x128xbf16> to vector<128x128xbf16>
    %c0_7 = arith.constant 0 : index
    %c0_8 = arith.constant 0 : index
    %5 = vector.load %arg4[%c0_7, %c0_8] : memref<128x128xbf16, #tpu.memory_space<vmem>>, vector<128x128xbf16>
    %6 = vector.extract_strided_slice %2 {offsets = [0, 0], sizes = [1, 128], strides = [1, 1]} : vector<6x128xf32> to vector<1x128xf32>
    %cst = arith.constant dense<0.000000e+00> : vector<128x128xf32>
    %7 = tpu.matmul %4, %5, %cst {dimension_numbers = #tpu.dot_dimension_numbers<[1], [0], [0], [1], [0, 0, 1, 1], [], []>} : vector<128x128xbf16>, vector<128x128xbf16>, vector<128x128xf32> -> vector<128x128xf32>
    %8 = arith.truncf %7 : vector<128x128xf32> to vector<128x128xbf16>
    %cst_9 = arith.constant dense<0.000000e+00> : vector<128x128xf32>
    %9 = tpu.matmul %1, %8, %cst_9 {dimension_numbers = #tpu.dot_dimension_numbers<[1], [0], [0], [1], [0, 0, 1, 1], [], []>} : vector<128x128xbf16>, vector<128x128xbf16>, vector<128x128xf32> -> vector<128x128xf32>
    %10 = vector.broadcast %6 : vector<1x128xf32> to vector<128x128xf32>
    %11 = arith.addf %9, %10 : vector<128x128xf32>
    %12 = math.tanh %11 : vector<128x128xf32>
    %13 = arith.truncf %12 : vector<128x128xf32> to vector<128x128xbf16>
    %c0_10 = arith.constant 0 : index
    %c0_11 = arith.constant 0 : index
    %14 = vector.load %arg5[%c0_10, %c0_11] : memref<640x128xbf16, #tpu.memory_space<vmem>>, vector<128x128xbf16>
    %15 = vector.extract_strided_slice %2 {offsets = [1, 0], sizes = [1, 128], strides = [1, 1]} : vector<6x128xf32> to vector<1x128xf32>
    %cst_12 = arith.constant dense<0.000000e+00> : vector<128x128xf32>
    %16 = tpu.matmul %13, %14, %cst_12 {dimension_numbers = #tpu.dot_dimension_numbers<[1], [0], [0], [1], [0, 0, 1, 1], [], []>} : vector<128x128xbf16>, vector<128x128xbf16>, vector<128x128xf32> -> vector<128x128xf32>
    %17 = arith.truncf %16 : vector<128x128xf32> to vector<128x128xbf16>
    %cst_13 = arith.constant dense<0.000000e+00> : vector<128x128xf32>
    %18 = tpu.matmul %1, %17, %cst_13 {dimension_numbers = #tpu.dot_dimension_numbers<[1], [0], [0], [1], [0, 0, 1, 1], [], []>} : vector<128x128xbf16>, vector<128x128xbf16>, vector<128x128xf32> -> vector<128x128xf32>
    %19 = vector.broadcast %15 : vector<1x128xf32> to vector<128x128xf32>
    %20 = arith.addf %18, %19 : vector<128x128xf32>
    %21 = math.tanh %20 : vector<128x128xf32>
    %22 = arith.truncf %21 : vector<128x128xf32> to vector<128x128xbf16>
    %c128 = arith.constant 128 : index
    %c0_14 = arith.constant 0 : index
    %23 = vector.load %arg5[%c128, %c0_14] : memref<640x128xbf16, #tpu.memory_space<vmem>>, vector<128x128xbf16>
    %24 = vector.extract_strided_slice %2 {offsets = [2, 0], sizes = [1, 128], strides = [1, 1]} : vector<6x128xf32> to vector<1x128xf32>
    %cst_15 = arith.constant dense<0.000000e+00> : vector<128x128xf32>
    %25 = tpu.matmul %22, %23, %cst_15 {dimension_numbers = #tpu.dot_dimension_numbers<[1], [0], [0], [1], [0, 0, 1, 1], [], []>} : vector<128x128xbf16>, vector<128x128xbf16>, vector<128x128xf32> -> vector<128x128xf32>
    %26 = arith.truncf %25 : vector<128x128xf32> to vector<128x128xbf16>
    %cst_16 = arith.constant dense<0.000000e+00> : vector<128x128xf32>
    %27 = tpu.matmul %1, %26, %cst_16 {dimension_numbers = #tpu.dot_dimension_numbers<[1], [0], [0], [1], [0, 0, 1, 1], [], []>} : vector<128x128xbf16>, vector<128x128xbf16>, vector<128x128xf32> -> vector<128x128xf32>
    %28 = vector.broadcast %24 : vector<1x128xf32> to vector<128x128xf32>
    %29 = arith.addf %27, %28 : vector<128x128xf32>
    %30 = arith.truncf %29 : vector<128x128xf32> to vector<128x128xbf16>
    %c256 = arith.constant 256 : index
    %c0_17 = arith.constant 0 : index
    %31 = vector.load %arg5[%c256, %c0_17] : memref<640x128xbf16, #tpu.memory_space<vmem>>, vector<128x128xbf16>
    %32 = vector.extract_strided_slice %2 {offsets = [3, 0], sizes = [1, 128], strides = [1, 1]} : vector<6x128xf32> to vector<1x128xf32>
    %cst_18 = arith.constant dense<0.000000e+00> : vector<128x128xf32>
    %33 = tpu.matmul %30, %31, %cst_18 {dimension_numbers = #tpu.dot_dimension_numbers<[1], [0], [0], [1], [0, 0, 1, 1], [], []>} : vector<128x128xbf16>, vector<128x128xbf16>, vector<128x128xf32> -> vector<128x128xf32>
    %34 = arith.truncf %33 : vector<128x128xf32> to vector<128x128xbf16>
    %cst_19 = arith.constant dense<0.000000e+00> : vector<128x128xf32>
    %35 = tpu.matmul %1, %34, %cst_19 {dimension_numbers = #tpu.dot_dimension_numbers<[1], [0], [0], [1], [0, 0, 1, 1], [], []>} : vector<128x128xbf16>, vector<128x128xbf16>, vector<128x128xf32> -> vector<128x128xf32>
    %36 = vector.broadcast %32 : vector<1x128xf32> to vector<128x128xf32>
    %37 = arith.addf %35, %36 : vector<128x128xf32>
    %38 = math.tanh %37 : vector<128x128xf32>
    %39 = arith.truncf %38 : vector<128x128xf32> to vector<128x128xbf16>
    %c384 = arith.constant 384 : index
    %c0_20 = arith.constant 0 : index
    %40 = vector.load %arg5[%c384, %c0_20] : memref<640x128xbf16, #tpu.memory_space<vmem>>, vector<128x128xbf16>
    %41 = vector.extract_strided_slice %2 {offsets = [4, 0], sizes = [1, 128], strides = [1, 1]} : vector<6x128xf32> to vector<1x128xf32>
    %cst_21 = arith.constant dense<0.000000e+00> : vector<128x128xf32>
    %42 = tpu.matmul %39, %40, %cst_21 {dimension_numbers = #tpu.dot_dimension_numbers<[1], [0], [0], [1], [0, 0, 1, 1], [], []>} : vector<128x128xbf16>, vector<128x128xbf16>, vector<128x128xf32> -> vector<128x128xf32>
    %43 = arith.truncf %42 : vector<128x128xf32> to vector<128x128xbf16>
    %cst_22 = arith.constant dense<0.000000e+00> : vector<128x128xf32>
    %44 = tpu.matmul %1, %43, %cst_22 {dimension_numbers = #tpu.dot_dimension_numbers<[1], [0], [0], [1], [0, 0, 1, 1], [], []>} : vector<128x128xbf16>, vector<128x128xbf16>, vector<128x128xf32> -> vector<128x128xf32>
    %45 = vector.broadcast %41 : vector<1x128xf32> to vector<128x128xf32>
    %46 = arith.addf %44, %45 : vector<128x128xf32>
    %47 = math.tanh %46 : vector<128x128xf32>
    %48 = arith.truncf %47 : vector<128x128xf32> to vector<128x128xbf16>
    %c512 = arith.constant 512 : index
    %c0_23 = arith.constant 0 : index
    %49 = vector.load %arg5[%c512, %c0_23] : memref<640x128xbf16, #tpu.memory_space<vmem>>, vector<128x128xbf16>
    %50 = vector.extract_strided_slice %2 {offsets = [5, 0], sizes = [1, 128], strides = [1, 1]} : vector<6x128xf32> to vector<1x128xf32>
    %cst_24 = arith.constant dense<0.000000e+00> : vector<128x128xf32>
    %51 = tpu.matmul %48, %49, %cst_24 {dimension_numbers = #tpu.dot_dimension_numbers<[1], [0], [0], [1], [0, 0, 1, 1], [], []>} : vector<128x128xbf16>, vector<128x128xbf16>, vector<128x128xf32> -> vector<128x128xf32>
    %52 = arith.truncf %51 : vector<128x128xf32> to vector<128x128xbf16>
    %cst_25 = arith.constant dense<0.000000e+00> : vector<128x128xf32>
    %53 = tpu.matmul %1, %52, %cst_25 {dimension_numbers = #tpu.dot_dimension_numbers<[1], [0], [0], [1], [0, 0, 1, 1], [], []>} : vector<128x128xbf16>, vector<128x128xbf16>, vector<128x128xf32> -> vector<128x128xf32>
    %54 = vector.broadcast %50 : vector<1x128xf32> to vector<128x128xf32>
    %55 = arith.addf %53, %54 : vector<128x128xf32>
    %56 = math.tanh %55 : vector<128x128xf32>
    %57 = arith.truncf %56 : vector<128x128xf32> to vector<128x128xbf16>
    %c0_26 = arith.constant 0 : index
    %c0_27 = arith.constant 0 : index
    %c0_28 = arith.constant 0 : index
    %58 = vector.load %arg2[%c0_26, %c0_27, %c0_28] : memref<1x16x128xbf16, #tpu.memory_space<vmem>>, vector<1x16x128xbf16>
    %59 = vector.shape_cast %58 : vector<1x16x128xbf16> to vector<16x128xbf16>
    %cst_29 = arith.constant dense<0.000000e+00> : vector<16x128xf32>
    %60 = tpu.matmul %59, %57, %cst_29 {dimension_numbers = #tpu.dot_dimension_numbers<[1], [0], [0], [1], [0, 0, 1, 1], [], []>} : vector<16x128xbf16>, vector<128x128xbf16>, vector<16x128xf32> -> vector<16x128xf32>
    %c0_30 = arith.constant 0 : index
    %c0_31 = arith.constant 0 : index
    %c0_32 = arith.constant 0 : index
    %61 = vector.load %arg7[%c0_30, %c0_31, %c0_32] : memref<1x16x128xf32, #tpu.memory_space<vmem>>, vector<1x16x128xf32>
    %62 = vector.shape_cast %61 : vector<1x16x128xf32> to vector<16x128xf32>
    %63 = vector.shape_cast %60 : vector<16x128xf32> to vector<1x16x128xf32>
    tpu.vector_store %arg7[%c0_30, %c0_31, %c0_32], %63 {strides = array<i32>} : memref<1x16x128xf32, #tpu.memory_space<vmem>>, vector<1x16x128xf32>,
    return
  }
  func.func @transform_0(%arg0: i32) -> (i32, i32, i32) {
    %c0_i32 = arith.constant 0 : i32
    %c0_i32_0 = arith.constant 0 : i32
    %c0_i32_1 = arith.constant 0 : i32
    return %arg0, %c0_i32, %c0_i32_0 : i32, i32, i32
  }
  func.func @transform_1(%arg0: i32) -> (i32, i32, i32) {
    %c0_i32 = arith.constant 0 : i32
    %c0_i32_0 = arith.constant 0 : i32
    %c0_i32_1 = arith.constant 0 : i32
    return %arg0, %c0_i32, %c0_i32_0 : i32, i32, i32
  }
  func.func @transform_2(%arg0: i32) -> (i32, i32, i32) {
    %c0_i32 = arith.constant 0 : i32
    %c0_i32_0 = arith.constant 0 : i32
    %c0_i32_1 = arith.constant 0 : i32
    return %arg0, %c0_i32, %c0_i32_0 : i32, i32, i32
  }
  func.func @transform_3(%arg0: i32) -> (i32, i32) {
    %c0_i32 = arith.constant 0 : i32
    %c0_i32_0 = arith.constant 0 : i32
    %c0_i32_1 = arith.constant 0 : i32
    return %c0_i32, %c0_i32_0 : i32, i32
  }
  func.func @transform_4(%arg0: i32) -> (i32, i32) {
    %c0_i32 = arith.constant 0 : i32
    %c0_i32_0 = arith.constant 0 : i32
    %c0_i32_1 = arith.constant 0 : i32
    return %c0_i32, %c0_i32_0 : i32, i32
  }
  func.func @transform_5(%arg0: i32) -> (i32, i32) {
    %c0_i32 = arith.constant 0 : i32
    %c0_i32_0 = arith.constant 0 : i32
    %c0_i32_1 = arith.constant 0 : i32
    return %c0_i32, %c0_i32_0 : i32, i32
  }
  func.func @transform_6(%arg0: i32) -> (i32, i32, i32) {
    %c0_i32 = arith.constant 0 : i32
    %c0_i32_0 = arith.constant 0 : i32
    %c0_i32_1 = arith.constant 0 : i32
    return %arg0, %c0_i32, %c0_i32_0 : i32, i32, i32
  }
}

</mosaic_0001>

<bundles_post_ra>
// kernel: tpu_custom_call.1
= control target key start
LH: loop header
LB: loop body
LE: loop exit
PB: predicated region body
PF: predicated region fallthrough
CT: control target
= control target key end

     0   :  { %s4223_s0 = inlined_call_operand.hbm [shape: bf16[2,128,128], index: 0, kind: input, shape index: {}]   ;;  %s4224_s1 = inlined_call_operand.hbm [shape: bf16[2,16,128], index: 1, kind: input, shape index: {}]   ;;  %s4225_s2 = inlined_call_operand.hbm [shape: bf16[2,128,128], index: 2, kind: input, shape index: {}]   ;;  %s4226_s3 = inlined_call_operand.hbm [shape: bf16[128,128], index: 3, kind: input, shape index: {}]   ;;  %s4227_s4 = inlined_call_operand.hbm [shape: bf16[640,128], index: 4, kind: input, shape index: {}]   ;;  %s4228_s5 = inlined_call_operand.vmem [shape: f32[6,128], index: 5, kind: input, shape index: {}]   ;;  %s4229_s6 = inlined_call_operand.hbm [shape: f32[2,16,128], index: 6, kind: output, shape index: {}]  }
   0x1   :  { %4247 = sst [smem:[#allocation20_spill]] %s4224_s1 }
   0x2   :  { %4248 = sst [smem:[#allocation21_spill]] %s4226_s3 }
   0x3   :  { %11 = vsyncpa [#allocation3], 0 }
   0x4   :  { %13 = vsyncpa [#allocation3 + $0x1], 0 }
   0x5   :  { %14 = vsyncpa [#allocation6], 0 }
   0x6   :  { %16 = vsyncpa [#allocation6 + $0x1], 0 }
   0x7   :  { %17 = vsyncpa [#allocation9], 0 }
   0x8   :  { %18 = vsyncpa [#allocation4], 0 }
   0x9   :  { %20 = vsyncpa [#allocation4 + $0x1], 0  ;;  %s3740_s21 = smov 0   ;;  %s3742_s22 = smov 0  }
   0xa   :  { %s3744_s23 = smov 0   ;;  %s3746_s24 = smov 0  }
   0xb LB: > { %4249 = sst [smem:[#allocation16_spill]] %s3687_s23  ;;  %s3761_s25 = sadd.s32 4294967295, %s3691_s24   ;;  %s3691_s24 = sphi %s3746_s24, %s4279_s24   ;;  %s3687_s23 = sphi %s3744_s23, %s4281_s23   ;;  %s3683_s22 = sphi %s3742_s22, %s4283_s22   ;;  %s3679_s21 = sphi %s3740_s21, %s4282_s21  }
   0xc   : > { %s2454_s26 = sadd.s32 4294967294, %s3691_s24   ;;  %s3765_s27 = sadd.s32 1, %s3691_s24  }
   0xd   : > { %4250 = sst [smem:[#allocation17_spill]] %s3765_s27  ;;  %s33_s28 = sadd.s32 1, %s3687_s23 }
   0xe   : > { %s30_s29 = ssub.s32 %s3691_s24, %s3765_s27  ;;  %p40_p0 = scmp.ne.s32.totalorder %s3687_s23, %s3683_s22 }
   0xf   : > { %p31_p1 = scmp.eq.s32.totalorder %s30_s29, 0  ;;  %p41_p2 = scmp.eq.s32.totalorder %s3691_s24, 0 }
  0x10   : > { %p46_p3 = scmp.ne.s32.totalorder %s3683_s22, %s3679_s21  ;;  %p4230_p4 = scmp.eq.s32.totalorder %s3761_s25, 0 }
  0x11   : > { %s3777_s30 = scalar_select %p31_p1, %s3687_s23, %s33_s28  }
  0x12   : > { %p3779_p5 = por %p41_p2, %p40_p0  ;;  %p3785_p6 = por %p4230_p4, %p46_p3 }
  0x13   : > { %4251 = sst [smem:[#allocation18_spill]] %s3777_s30  ;;  %p185_p7 = scmp.eq.s32.totalorder %s3761_s25, 1 }
  0x14   : > { %s4252_s7 = scalar_select %p3779_p5, 1, 0 }
  0x15   : > { %s4253_s8 = scalar_select %p3785_p6, 1, 0 }
  0x16   : > { %p191_p8 = scmp.eq.s32.totalorder %s2454_s26, 1  ;;  %p2455_p9 = scmp.ge.s32.totalorder %s3691_s24, 1 }
  0x17   : > { %p198_p10 = scmp.lt.s32.totalorder %s3691_s24, 3  ;;  %p3792_p11 = por %p185_p7, %p40_p0 }
  0x18   : > { %p3796_p12 = por %p191_p8, %p46_p3  ;;  %s3693_s12 = smov [#allocation8]  }
  0x19   : > { %s4254_s9 = scalar_select %p3792_p11, 1, 0 }
  0x1a   : > { %s4255_s10 = scalar_select %p3796_p12, 1, 0 }
  0x1b   : > { %p3800_p13 = pnand %p2455_p9, %p198_p10  ;;  %s210_s13 = sshll.u32 %s3693_s12, 4  ;;  %s211_s13 = int_to_ptr.vmem [resolvable:$true] %s210_s13 }
  0x1c   : > { %4256 = sst [smem:[#allocation19_spill]] %s4255_s10  ;;  %s3815_s15 = sand.u32 1, %s3687_s23  }
  0x1d   : > { %s4257_s11 = scalar_select %p3800_p13, 1, 0 }
  0x1e   : > { %p3170_p1 = pneg %p3800_p13  ;;  %s261_s16 = sand.u32 1, %s3691_s24  }
  0x1f   : > { %s4259_s3 = sld [smem:[#allocation21_spill]] }
  0x20   : > { %p3808_p2 = pnand %p3170_p1, %p4230_p4 }
  0x22   : > { %s4258_s14 = scalar_select %p3808_p2, 1, 0 }
  0x23   : > { %p4237_p8 = pneg %p3808_p2 }
  0x25   : > { %s3471_s19 = scalar_lea.hbm %s4259_s3, 1024 }
  0x26   : > { %p3472_p7 = scmp.ne.s32.totalorder %s4259_s3, %s3471_s19  ;;  %p3478_p1 = scmp.lt.u32.totalorder %s3471_s19, %s4259_s3 }
  0x28   : > { %p3474_p9 = pnand %p4237_p8, %p3472_p7 }
  0x2a   : > { %p3475_p10 = pneg %p3474_p9 }
  0x2c   : > { %p3480_p0 = pnand %p3478_p1, %p3475_p10 }
  0x2e   : > { %3483 = shalt.err (!%p3480_p0)
}
  0x2f   : > { %s3484_s12 = scalar_lea.vmem %s211_s13, 1024  ;;  %p3492_p11 = scmp.lt.s32.totalorder %s211_s13, %s211_s13 }
  0x30   : > { %p3485_p4 = scmp.ne.s32.totalorder %s211_s13, %s3484_s12  ;;  %p3493_p6 = scmp.lt.s32.totalorder %s3484_s12, %s3484_s12 }
  0x32   : > { %p3487_p3 = pnand %p3485_p4, %p4237_p8  ;;  %p3494_p13 = por %p3493_p6, %p3492_p11 }
  0x34   : > { %p3488_p12 = pneg %p3487_p3 }
  0x36   : > { %p3495_p5 = pnand %p3494_p13, %p3488_p12 }
  0x38   : > { %3498 = shalt.err (!%p3495_p5)
}
  0x39   : > { %s4235_s17 = smov 64   ;;  %s3695_s18 = smov 4  }
  0x3a   : > { %3173 = dma.hbm_to_vmem [thread:$0]  (!%p3808_p2), %s4259_s3, 1024, %s211_s13, [#allocation9], %s4235_s17, %s4235_s17, %s3695_s18  }
  0x3b   : > { %p4260_p4 = scmp.ne.s32.totalorder %s4252_s7, 0  ;;  %p4261_p0 = scmp.lt.s32.totalorder %s3691_s24, 2 }
  0x3c   : > { %s2462_s28 = sshll.u32 %s3815_s15, 3  ;;  %s2546_s29 = sshll.u32 %s3691_s24, 7 }
  0x3d   : > { %p3847_p6 = pnand %p4261_p0, %p4260_p4  ;;  %s4263_s1 = sld [smem:[#allocation20_spill]] }
  0x3e   : > { %s265_s19 = scalar_lea.vmem [#allocation5], %s2462_s28  ;;  %s3860_s7 = scalar_lea.sflag [#allocation6], %s261_s16 }
  0x3f   : > { %s4262_s26 = scalar_select %p3847_p6, 1, 0 }
  0x40   : > { %s272_s13 = sshll.u32 %s265_s19, 4  ;;  %p3866_p11 = pneg %p3847_p6  ;;  %s3858_s13 = int_to_ptr.vmem [resolvable:$true] %s272_s13 }
  0x42   : > { %s4264_s17 = scalar_select %p3866_p11, 1, 0 }
  0x43   : > { %s3856_s23 = scalar_lea.hbm %s4263_s1, %s2546_s29  ;;  %s3504_s28 = scalar_lea.hbm %s4263_s1, 256 }
  0x44   : > { %s3499_s20 = scalar_lea.hbm %s3856_s23, 128  ;;  %p3505_p3 = scmp.lt.u32.totalorder %s3856_s23, %s4263_s1 }
  0x45   : > { %p3500_p5 = scmp.ne.s32.totalorder %s3856_s23, %s3499_s20  ;;  %p3506_p7 = scmp.lt.u32.totalorder %s3504_s28, %s3499_s20 }
  0x46   : > { %p3508_p10 = scmp.lt.u32.totalorder %s3499_s20, %s3856_s23 }
  0x47   : > { %p3502_p12 = pnand %p3866_p11, %p3500_p5  ;;  %p3507_p9 = por %p3506_p7, %p3505_p3 }
  0x49   : > { %p3503_p13 = pneg %p3502_p12  ;;  %p3509_p1 = por %p3508_p10, %p3507_p9 }
  0x4b   : > { %p3510_p4 = pnand %p3509_p1, %p3503_p13 }
  0x4d   : > { %3513 = shalt.err (!%p3510_p4)
}
  0x4e   : > { %s3514_s16 = scalar_lea.vmem %s3858_s13, 128  ;;  %s3696_s30 = smov [#allocation5]  }
  0x4f   : > { %p3515_p0 = scmp.ne.s32.totalorder %s3858_s13, %s3514_s16  ;;  %s3519_s29 = sshll.u32 %s3696_s30, 4  ;;  %s3520_s29 = int_to_ptr.vmem [resolvable:$false] %s3519_s29 }
  0x50   : > { %s3521_s12 = scalar_lea.vmem %s3520_s29, 256  ;;  %p3522_p8 = scmp.lt.s32.totalorder %s3858_s13, %s3520_s29 }
  0x51   : > { %p3517_p5 = pnand %p3515_p0, %p3866_p11  ;;  %p3523_p2 = scmp.lt.s32.totalorder %s3521_s12, %s3514_s16 }
  0x53   : > { %p3518_p12 = pneg %p3517_p5  ;;  %p3524_p3 = por %p3523_p2, %p3522_p8 }
  0x55   : > { %p3525_p7 = pnand %p3524_p3, %p3518_p12 }
  0x57   : > { %3528 = shalt.err (!%p3525_p7)
}
  0x58   : > { %s4265_s20 = smov 64   ;;  %s3697_s28 = smov [#allocation10]  }
  0x59   : > { %3183 = dma.hbm_to_vmem [thread:$0]  (!%p3847_p6), %s3856_s23, 128, %s3858_s13, %s3860_s7, %s4265_s20, %s4265_s20, %s3695_s18  }
  0x5a   : > { %s223_s19 = sshll.u32 %s3697_s28, 4  ;;  %s2459_s30 = sshll.u32 %s3815_s15, 6  ;;  %s224_s19 = int_to_ptr.vmem [resolvable:$true] %s223_s19 }
  0x5b   : > { %s3529_s12 = scalar_lea.hbm %s4227_s4, 5120  ;;  %p4266_p8 = scmp.ne.s32.totalorder %s4258_s14, 0 }
  0x5c   : > { %p3530_p2 = scmp.ne.s32.totalorder %s4227_s4, %s3529_s12  ;;  %p3536_p1 = scmp.lt.u32.totalorder %s3529_s12, %s4227_s4 }
  0x5d   : > { %p4267_p13 = pneg %p4266_p8 }
  0x5f   : > { %p3532_p9 = pnand %p3530_p2, %p4267_p13 }
  0x61   : > { %p3533_p10 = pneg %p3532_p9 }
  0x63   : > { %p3538_p4 = pnand %p3536_p1, %p3533_p10 }
  0x65   : > { %3541 = shalt.err (!%p3538_p4)
}
  0x66   : > { %s3542_s23 = scalar_lea.vmem %s224_s19, 5120  ;;  %p4268_p5 = pmov %p4267_p13 }
  0x67   : > { %p3543_p0 = scmp.ne.s32.totalorder %s224_s19, %s3542_s23  ;;  %p3550_p7 = scmp.lt.s32.totalorder %s224_s19, %s224_s19 }
  0x68   : > { %p3551_p6 = scmp.lt.s32.totalorder %s3542_s23, %s3542_s23 }
  0x69   : > { %p3545_p12 = pnand %p3543_p0, %p4268_p5 }
  0x6a   : > { %p3552_p11 = por %p3551_p6, %p3550_p7 }
  0x6b   : > { %p3546_p3 = pneg %p3545_p12 }
  0x6d   : > { %p3553_p2 = pnand %p3552_p11, %p3546_p3 }
  0x6f   : > { %3556 = shalt.err (!%p3553_p2)
}
  0x70   : > { %3176 = dma.hbm_to_vmem [thread:$0]  (!%p4266_p8), %s4227_s4, 5120, %s224_s19, [#allocation9], %s4265_s20, %s4265_s20, %s3695_s18  }
  0x71   : > { %s2545_s27 = sshll.u32 %s3691_s24, 10  ;;  %s244_s14 = scalar_lea.vmem [#allocation2], %s2459_s30 }
  0x72   : > { %s3923_s28 = scalar_lea.hbm %s4223_s0, %s2545_s27  ;;  %s251_s29 = sshll.u32 %s244_s14, 4  ;;  %s3927_s29 = int_to_ptr.vmem [resolvable:$true] %s251_s29 }
  0x73   : > { %s241_s16 = scalar_lea.sflag [#allocation3], %s3815_s15  ;;  %s3557_s12 = scalar_lea.hbm %s3923_s28, 1024 }
  0x74   : > { %p3558_p6 = scmp.ne.s32.totalorder %s3923_s28, %s3557_s12  ;;  %p4269_p11 = scmp.ne.s32.totalorder %s4264_s17, 0 }
  0x75   : > { %s3562_s1 = scalar_lea.hbm %s4223_s0, 2048  ;;  %p3563_p9 = scmp.lt.u32.totalorder %s3923_s28, %s4223_s0 }
  0x76   : > { %p3560_p8 = pnand %p3558_p6, %p4269_p11  ;;  %p3564_p10 = scmp.lt.u32.totalorder %s3562_s1, %s3557_s12 }
  0x77   : > { %p3566_p4 = scmp.lt.u32.totalorder %s3557_s12, %s3923_s28 }
  0x78   : > { %p3561_p13 = pneg %p3560_p8  ;;  %p3565_p1 = por %p3564_p10, %p3563_p9 }
  0x7a   : > { %p3567_p0 = por %p3566_p4, %p3565_p1 }
  0x7c   : > { %p3568_p5 = pnand %p3567_p0, %p3561_p13 }
  0x7e   : > { %3571 = shalt.err (!%p3568_p5)
}
  0x7f   : > { %s3572_s13 = scalar_lea.vmem %s3927_s29, 1024  ;;  %s3698_s14 = smov [#allocation2]  }
  0x80   : > { %p3573_p12 = scmp.ne.s32.totalorder %s3927_s29, %s3572_s13  ;;  %s3577_s19 = sshll.u32 %s3698_s14, 4  ;;  %s3578_s19 = int_to_ptr.vmem [resolvable:$false] %s3577_s19 }
  0x81   : > { %s3579_s23 = scalar_lea.vmem %s3578_s19, 2048  ;;  %p3580_p2 = scmp.lt.s32.totalorder %s3927_s29, %s3578_s19 }
  0x82   : > { %p3575_p3 = pnand %p3573_p12, %p4269_p11  ;;  %p3581_p6 = scmp.lt.s32.totalorder %s3579_s23, %s3572_s13 }
  0x84   : > { %p3576_p7 = pneg %p3575_p3  ;;  %p3582_p8 = por %p3581_p6, %p3580_p2 }
  0x86   : > { %p3583_p9 = pnand %p3582_p8, %p3576_p7 }
  0x88   : > { %3586 = shalt.err (!%p3583_p9)
}
  0x89   : > { %p4270_p13 = scmp.ne.s32.totalorder %s4262_s26, 0  ;;  %s3961_s3 = scalar_lea.hbm %s4225_s2, %s2545_s27 }
  0x8a   : > { %s286_s10 = scalar_lea.vmem [#allocation7], %s2459_s30  ;;  %s3587_s14 = scalar_lea.hbm %s3961_s3, 1024 }
  0x8b   : > { %3180 = dma.hbm_to_vmem [thread:$0]  (!%p4270_p13), %s3923_s28, 1024, %s3927_s29, %s241_s16, %s4265_s20, %s4265_s20, %s3695_s18  }
  0x8c   : > { %s293_s13 = sshll.u32 %s286_s10, 4  ;;  %p3588_p10 = scmp.ne.s32.totalorder %s3961_s3, %s3587_s14  ;;  %s3965_s13 = int_to_ptr.vmem [resolvable:$true] %s293_s13 }
  0x8d   : > { %s3592_s16 = scalar_lea.hbm %s4225_s2, 2048  ;;  %p3593_p0 = scmp.lt.u32.totalorder %s3961_s3, %s4225_s2 }
  0x8e   : > { %p3590_p1 = pnand %p3588_p10, %p4269_p11  ;;  %p3594_p5 = scmp.lt.u32.totalorder %s3592_s16, %s3587_s14 }
  0x8f   : > { %p3596_p3 = scmp.lt.u32.totalorder %s3587_s14, %s3961_s3 }
  0x90   : > { %p3591_p4 = pneg %p3590_p1  ;;  %p3595_p12 = por %p3594_p5, %p3593_p0 }
  0x92   : > { %p3597_p7 = por %p3596_p3, %p3595_p12 }
  0x94   : > { %p3598_p2 = pnand %p3597_p7, %p3591_p4 }
  0x96   : > { %3601 = shalt.err (!%p3598_p2)
}
  0x97   : > { %s3602_s15 = scalar_lea.vmem %s3965_s13, 1024  ;;  %s3699_s30 = smov [#allocation7]  }
  0x98   : > { %p3603_p6 = scmp.ne.s32.totalorder %s3965_s13, %s3602_s15  ;;  %s3607_s23 = sshll.u32 %s3699_s30, 4  ;;  %s3608_s23 = int_to_ptr.vmem [resolvable:$false] %s3607_s23 }
  0x99   : > { %s3609_s12 = scalar_lea.vmem %s3608_s23, 2048  ;;  %p3610_p10 = scmp.lt.s32.totalorder %s3965_s13, %s3608_s23 }
  0x9a   : > { %p3605_p8 = pnand %p3603_p6, %p4269_p11  ;;  %p3611_p1 = scmp.lt.s32.totalorder %s3609_s12, %s3602_s15 }
  0x9c   : > { %p3606_p9 = pneg %p3605_p8  ;;  %p3612_p0 = por %p3611_p1, %p3610_p10 }
  0x9e   : > { %p3613_p5 = pnand %p3612_p0, %p3606_p9 }
  0xa0   : > { %3616 = shalt.err (!%p3613_p5)
}
  0xa1   : > { %3186 = dma.hbm_to_vmem [thread:$0]  (!%p4270_p13), %s3961_s3, 1024, %s3965_s13, %s3860_s7, %s4265_s20, %s4265_s20, %s3695_s18  }
  0xa2   : > { %p4271_p11 = scmp.ne.s32.totalorder %s4257_s11, 0 }
  0xa3   : > { %s3995_s17 = sand.u32 (!%p4271_p11), 1, %s3683_s22   ;;  %p4272_p4 = scmp.ne.s32.totalorder (!%p4271_p11), %s4253_s8, 0 }
  0xa4   : > { %305 = sbr.rel (%p4271_p11) target bundleno = 3339 (0xd0b), region = 44  ;;  %s2469_s1 = sshll.u32 (!%p4271_p11), %s3995_s17, 6 }
  0xa5   : > { %s308_s10 = scalar_lea.sflag (!%p4271_p11), [#allocation3], %s3995_s17  ;;  %s3999_s14 = scalar_lea.vmem (!%p4271_p11), [#allocation2], %s2469_s1 }
  0xab   : > { %3662 = dma.done.wait (%p4272_p4), %s308_s10, 1024  }
  0xac   : > { %3664 = vsyncadd (%p4272_p4), %s308_s10, 4294966272  ;;  %s316_s11 = sand.u32 1, %s3761_s25   ;;  %s2470_s18 = sshll.u32 %s3995_s17, 3 }
  0xad   : > { %s317_s26 = scalar_lea.sflag [#allocation6], %s316_s11  ;;  %s4007_s7 = scalar_lea.vmem [#allocation5], %s2470_s18 }
  0xae   : > { %3666 = dma.done.wait (%p4272_p4), %s317_s26, 1152  }
  0xaf   : > { %3668 = vsyncadd (%p4272_p4), %s317_s26, 4294966144  ;;  %s4013_s20 = scalar_lea.vmem [#allocation7], %s2469_s1  ;;  %p4273_p13 = scmp.eq.s32.totalorder %s3761_s25, 0 }
  0xb1   : > { %3670 = dma.done.wait (%p4273_p13), [#allocation9], 6144   ;;  %p4274_p12 = pmov %p4273_p13 }
  0xb2   : > { %v3237_v0 = vld [vmem:[#allocation8] sm:$0xff]   ;;  %v3238_v1 = vld [vmem:[#allocation8 + $0x8] sm:$0xff]   ;;  %v3239_v2 = vld [vmem:[#allocation8 + $0x10] sm:$0xff]   ;;  %v627_v56 = vlaneseq  ;;  %vm3701_vm0 = vmmov 0   ;;  %s2474_s29 = sshll.u32 %s3995_s17, 4  ;;  %s2548_s19 = sshll.u32 %s3761_s25, 8 }
  0xb3   : > { %3672 = vsyncadd (%p4274_p12), [#allocation9], 4294961152  ;;  %2750 = vmatprep.subr.bf16.mxu0 %v3237_v0  ;;  %v3240_v3 = vld [vmem:[#allocation8 + $0x18] sm:$0xff]   ;;  %v3245_v4 = vld [vmem:[%s4013_s20] sm:$0xff]   ;;  %s375_s16 = scalar_lea.vmem [#allocation11], %s2474_s29  ;;  %s4179_s23 = scalar_lea.hbm %s4229_s6, %s2548_s19 }
  0xb4   : > { %2751 = vmatpush3.bf16.msra.mxu0 %v3237_v0  ;;  %2766 = vmatprep.mubr.bf16.mxu0 %v3245_v4  ;;  %v3241_v5 = vld [vmem:[#allocation8 + $0x20] sm:$0xff]   ;;  %v3242_v6 = vld [vmem:[#allocation8 + $0x28] sm:$0xff]   ;;  %v3243_v7 = vld [vmem:[#allocation8 + $0x30] sm:$0xff]   ;;  %v4060_v57 = vshrl.u32 %v627_v56, 7  ;;  %s2319_s27 = sshll.u32 %s375_s16, 4  ;;  %s2306_s12 = scalar_lea.sflag [#allocation4], %s3995_s17  ;;  %s4174_s27 = int_to_ptr.vmem [resolvable:$true] %s2319_s27 }
  0xb5   : > { %2752 = vmatprep.subr.bf16.mxu0 %v3238_v1  ;;  %v3244_v8 = vld [vmem:[#allocation8 + $0x38] sm:$0xff]   ;;  %v3246_v9 = vld [vmem:[%s4013_s20 + $0x8] sm:$0xff]   ;;  %v3247_v10 = vld [vmem:[%s4013_s20 + $0x10] sm:$0xff]   ;;  %s3617_s1 = scalar_lea.vmem %s4174_s27, 256  ;;  %p4275_p7 = scmp.ne.s32.totalorder %s4254_s9, 0 }
  0xb6   : > { %v3248_v11 = vld [vmem:[%s4013_s20 + $0x18] sm:$0xff]   ;;  %v3249_v12 = vld [vmem:[%s4013_s20 + $0x20] sm:$0xff]   ;;  %v3250_v13 = vld [vmem:[%s4013_s20 + $0x28] sm:$0xff]   ;;  %v629_v58 = vsub.s32 0, %v4060_v57  ;;  %p3618_p3 = scmp.ne.s32.totalorder %s4174_s27, %s3617_s1  ;;  %s3702_s25 = smov [#allocation11]  }
  0xb7   : > { %v3251_v14 = vld [vmem:[%s4013_s20 + $0x30] sm:$0xff]   ;;  %v3252_v15 = vld [vmem:[%s4013_s20 + $0x38] sm:$0xff]   ;;  %v3261_v17 = vld [vmem:[#allocation10] sm:$0xff]   ;;  %s3621_s10 = sshll.u32 %s3702_s25, 4  ;;  %s3622_s10 = int_to_ptr.vmem [resolvable:$false] %s3621_s10 }
  0xb8   : > { %2753 = vmatpush3.bf16.msra.mxu0 %v3238_v1  ;;  %v4028_v16 = vld [vmem:[%s3999_s14] sm:$0xff]   ;;  %v3262_v18 = vld [vmem:[#allocation10 + $0x8] sm:$0xff]   ;;  %v4032_v44 = vld [vmem:[%s3999_s14 + $0x8] sm:$0xff]   ;;  %p3619_p2 = pnand %p3618_p3, %p4275_p7  ;;  %p3624_p8 = scmp.lt.s32.totalorder %s4174_s27, %s3622_s10 }
  0xb9   : > { %2754 = vmatprep.subr.bf16.mxu0 %v3239_v2  ;;  %2798 = vmatprep.mubr.bf16.mxu1 %v4028_v16  ;;  %v3263_v19 = vld [vmem:[#allocation10 + $0x10] sm:$0xff]   ;;  %v4035_v45 = vld [vmem:[%s3999_s14 + $0x10] sm:$0xff]   ;;  %v4040_v46 = vld [vmem:[%s3999_s14 + $0x18] sm:$0xff]  }
  0xba   : > { %v4043_v47 = vld [vmem:[%s3999_s14 + $0x20] sm:$0xff]   ;;  %v4048_v48 = vld [vmem:[%s3999_s14 + $0x28] sm:$0xff]   ;;  %v4051_v49 = vld [vmem:[%s3999_s14 + $0x30] sm:$0xff]   ;;  %p3620_p6 = pneg %p3619_p2 }
  0xbb   : > { %v4056_v50 = vld [vmem:[%s3999_s14 + $0x38] sm:$0xff]   ;;  %v3264_v51 = vld [vmem:[#allocation10 + $0x18] sm:$0xff]   ;;  %v3265_v52 = vld [vmem:[#allocation10 + $0x20] sm:$0xff]  }
  0xbc   : > { %2755 = vmatpush3.bf16.msra.mxu0 %v3239_v2  ;;  %v3266_v53 = vld [vmem:[#allocation10 + $0x28] sm:$0xff]   ;;  %v3267_v54 = vld [vmem:[#allocation10 + $0x30] sm:$0xff]   ;;  %v3268_v55 = vld [vmem:[#allocation10 + $0x38] sm:$0xff]  }
  0xbd   : > { %2756 = vmatprep.subr.bf16.mxu0 %v3240_v3  ;;  %v4066_v59 = vld [vmem:[%s4228_s5] sm:$0x3f] }
  0xbe   : > { %v630_v60 = vrot.slane %v4066_v59, %v629_v58 }
  0xc0   : > { %2757 = vmatpush3.bf16.msra.mxu0 %v3240_v3 }
  0xc1   : > { %2758 = vmatprep.subr.bf16.mxu0 %v3241_v5 }
  0xc4   : > { %2759 = vmatpush3.bf16.msra.mxu0 %v3241_v5 }
  0xc5   : > { %2760 = vmatprep.subr.bf16.mxu0 %v3242_v6 }
  0xc8   : > { %2761 = vmatpush3.bf16.msra.mxu0 %v3242_v6 }
  0xc9   : > { %2762 = vmatprep.subr.bf16.mxu0 %v3243_v7 }
  0xcc   : > { %2763 = vmatpush3.bf16.msra.mxu0 %v3243_v7 }
  0xcd   : > { %2764 = vmatprep.subr.bf16.mxu0 %v3244_v8 }
  0xd0   : > { %2765 = vmatpush3.bf16.msra.mxu0 %v3244_v8 }
  0xd1   : > { %2814 = vmatprep.subr.bf16.mxu0 %v3261_v17 }
  0xd3   : > { %2767 = vmatmul.mubr.bf16.vlgmr.msra.gmra.mrb[0].mxu0 %v3246_v9 }
  0xd4   : > { %2770 = vmatprep.mubr.bf16.mxu0 %v3247_v10  ;;  %2815 = vmatpush3.bf16.msra.mxu0 %v3261_v17 }
  0xd5   : > { %2816 = vmatprep.subr.bf16.mxu0 %v3262_v18 }
  0xd8   : > { %2817 = vmatpush3.bf16.msra.mxu0 %v3262_v18 }
  0xd9   : > { %2818 = vmatprep.subr.bf16.mxu0 %v3263_v19 }
  0xdb   : > { %2771 = vmatmul.mubr.bf16.gmra.mrb[4].mxu0 %v3248_v11 }
  0xdc   : > { %2774 = vmatprep.mubr.bf16.mxu0 %v3249_v12  ;;  %2819 = vmatpush3.bf16.msra.mxu0 %v3263_v19 }
  0xdd   : > { %2820 = vmatprep.subr.bf16.mxu0 %v3264_v51 }
  0xe0   : > { %2821 = vmatpush3.bf16.msra.mxu0 %v3264_v51 }
  0xe1   : > { %2822 = vmatprep.subr.bf16.mxu0 %v3265_v52 }
  0xe3   : > { %2775 = vmatmul.mubr.bf16.gmra.mrb[8].mxu0 %v3250_v13 }
  0xe4   : > { %2778 = vmatprep.mubr.bf16.mxu0 %v3251_v14  ;;  %2823 = vmatpush3.bf16.msra.mxu0 %v3265_v52 }
  0xe5   : > { %2824 = vmatprep.subr.bf16.mxu0 %v3266_v53 }
  0xe8   : > { %2825 = vmatpush3.bf16.msra.mxu0 %v3266_v53 }
  0xe9   : > { %2826 = vmatprep.subr.bf16.mxu0 %v3267_v54 }
  0xeb   : > { %2779 = vmatmul.mubr.bf16.gmra.mrb[12].mxu0 %v3252_v15 }
  0xec   : > { %2827 = vmatpush3.bf16.msra.mxu0 %v3267_v54 }
  0xed   : > { %2828 = vmatprep.subr.bf16.mxu0 %v3268_v55 }
  0xf0   : > { %2829 = vmatpush3.bf16.msra.mxu0 %v3268_v55 }
 0x1a6   : > { %v2768_v20 = vpop.f32.mrb[0].mxu0 }
 0x1a7   : > { %v556_v21 = vpop.f32.mrb[1].mxu0 }
 0x1a8   : > { %v2769_v22 = vpop.f32.mrb[2].mxu0 }
 0x1a9   : > { %v620_v23 = vpack.c.bf16 %v2769_v22, %v2768_v20  ;;  %v559_v24 = vpop.f32.mrb[3].mxu0 }
 0x1aa   : > { %v619_v25 = vpack.c.bf16 %v559_v24, %v556_v21 }
 0x1ac   : > { %2782 = vmatprep.subr.bf16.mxu1 %v619_v25 }
 0x1ad   : > { %2783 = vmatpush3.bf16.msra.mxu1 %v619_v25 }
 0x1ae   : > { %v2772_v26 = vpop.f32.mrb[4].mxu0  ;;  %2784 = vmatprep.subr.bf16.mxu1 %v620_v23 }
 0x1af   : > { %v572_v27 = vpop.f32.mrb[5].mxu0 }
 0x1b0   : > { %v2773_v28 = vpop.f32.mrb[6].mxu0 }
 0x1b1   : > { %v622_v29 = vpack.c.bf16 %v2773_v28, %v2772_v26  ;;  %v575_v30 = vpop.f32.mrb[7].mxu0  ;;  %2785 = vmatpush3.bf16.msra.mxu1 %v620_v23 }
 0x1b2   : > { %v621_v31 = vpack.c.bf16 %v575_v30, %v572_v27 }
 0x1b4   : > { %2786 = vmatprep.subr.bf16.mxu1 %v621_v31 }
 0x1b5   : > { %2787 = vmatpush3.bf16.msra.mxu1 %v621_v31 }
 0x1b6   : > { %v2776_v32 = vpop.f32.mrb[8].mxu0  ;;  %2788 = vmatprep.subr.bf16.mxu1 %v622_v29 }
 0x1b7   : > { %v588_v33 = vpop.f32.mrb[9].mxu0 }
 0x1b8   : > { %v2777_v34 = vpop.f32.mrb[10].mxu0 }
 0x1b9   : > { %v624_v35 = vpack.c.bf16 %v2777_v34, %v2776_v32  ;;  %v591_v36 = vpop.f32.mrb[11].mxu0  ;;  %2789 = vmatpush3.bf16.msra.mxu1 %v622_v29 }
 0x1ba   : > { %v623_v37 = vpack.c.bf16 %v591_v36, %v588_v33 }
 0x1bc   : > { %2790 = vmatprep.subr.bf16.mxu1 %v623_v37 }
 0x1bd   : > { %2791 = vmatpush3.bf16.msra.mxu1 %v623_v37 }
 0x1be   : > { %v2780_v38 = vpop.f32.mrb[12].mxu0  ;;  %2792 = vmatprep.subr.bf16.mxu1 %v624_v35 }
 0x1bf   : > { %v604_v39 = vpop.f32.mrb[13].mxu0 }
 0x1c0   : > { %v2781_v40 = vpop.f32.mrb[14].mxu0 }
 0x1c1   : > { %v626_v41 = vpack.c.bf16 %v2781_v40, %v2780_v38  ;;  %v607_v42 = vpop.f32.mrb[15].mxu0  ;;  %2793 = vmatpush3.bf16.msra.mxu1 %v624_v35 }
 0x1c2   : > { %v625_v43 = vpack.c.bf16 %v607_v42, %v604_v39 }
 0x1c4   : > { %2794 = vmatprep.subr.bf16.mxu1 %v625_v43 }
 0x1c5   : > { %2795 = vmatpush3.bf16.msra.mxu1 %v625_v43 }
 0x1c6   : > { %2796 = vmatprep.subr.bf16.mxu1 %v626_v41 }
 0x1c9   : > { %2797 = vmatpush3.bf16.msra.mxu1 %v626_v41 }
 0x1cc   : > { %2799 = vmatmul.mubr.bf16.vlgmr.msra.gmra.mrb[0].mxu1 %v4032_v44 }
 0x1cd   : > { %2802 = vmatprep.mubr.bf16.mxu1 %v4035_v45 }
 0x1d4   : > { %2803 = vmatmul.mubr.bf16.gmra.mrb[4].mxu1 %v4040_v46 }
 0x1d5   : > { %2806 = vmatprep.mubr.bf16.mxu1 %v4043_v47 }
 0x1dc   : > { %2807 = vmatmul.mubr.bf16.gmra.mrb[8].mxu1 %v4048_v48 }
 0x1dd   : > { %2810 = vmatprep.mubr.bf16.mxu1 %v4051_v49 }
 0x1e4   : > { %2811 = vmatmul.mubr.bf16.gmra.mrb[12].mxu1 %v4056_v50 }
 0x1e5   : > { %2862 = vmatprep.mubr.bf16.mxu1 %v4028_v16 }
 0x29f   : > { %v2800_v61 = vpop.f32.mrb[0].mxu1 }
 0x2a0   : > { %v722_v62 = vadd.f32 %v2800_v61, %v630_v60  ;;  %v713_v63 = vpop.f32.mrb[1].mxu1 }
 0x2a1   : > { %v714_v0 = vadd.f32 %v713_v63, %v630_v60  ;;  %v2801_v1 = vpop.f32.mrb[2].mxu1 }
 0x2a2   : > { %3302 = vtanh.f32 %v722_v62  ;;  %v725_v2 = vadd.f32 %v2801_v1, %v630_v60  ;;  %v716_v3 = vpop.f32.mrb[3].mxu1  ;;  %v3271_v1 = vld [vmem:[#allocation10 + $0x50] sm:$0xff]  }
 0x2a3   : > { %3304 = vtanh.f32 %v714_v0  ;;  %v717_v4 = vadd.f32 %v716_v3, %v630_v60  ;;  %v3270_v0 = vld [vmem:[#allocation10 + $0x48] sm:$0xff]  }
 0x2a4   : > { %3306 = vtanh.f32 %v725_v2 }
 0x2a5   : > { %3308 = vtanh.f32 %v717_v4 }
 0x2a7   : > { %v2804_v5 = vpop.f32.mrb[4].mxu1 }
 0x2a8   : > { %v738_v6 = vadd.f32 %v2804_v5, %v630_v60  ;;  %v729_v7 = vpop.f32.mrb[5].mxu1 }
 0x2a9   : > { %v730_v8 = vadd.f32 %v729_v7, %v630_v60  ;;  %v2805_v9 = vpop.f32.mrb[6].mxu1 }
 0x2aa   : > { %3310 = vtanh.f32 %v738_v6  ;;  %v741_v10 = vadd.f32 %v2805_v9, %v630_v60  ;;  %v732_v11 = vpop.f32.mrb[7].mxu1 }
 0x2ab   : > { %3312 = vtanh.f32 %v730_v8  ;;  %v733_v12 = vadd.f32 %v732_v11, %v630_v60 }
 0x2ac   : > { %v3303_v13 = vpop.eup %3302  ;;  %3314 = vtanh.f32 %v741_v10 }
 0x2ad   : > { %v3305_v14 = vpop.eup %3304  ;;  %3316 = vtanh.f32 %v733_v12 }
 0x2ae   : > { %v3307_v15 = vpop.eup %3306 }
 0x2af   : > { %v3309_v17 = vpop.eup %3308  ;;  %v2808_v18 = vpop.f32.mrb[8].mxu1  ;;  %v793_v19 = vpack.c.bf16 %v3307_v15, %v3303_v13 }
 0x2b0   : > { %v754_v20 = vadd.f32 %v2808_v18, %v630_v60  ;;  %v745_v21 = vpop.f32.mrb[9].mxu1  ;;  %v792_v22 = vpack.c.bf16 %v3309_v17, %v3305_v14 }
 0x2b1   : > { %v746_v23 = vadd.f32 %v745_v21, %v630_v60  ;;  %v2809_v24 = vpop.f32.mrb[10].mxu1 }
 0x2b2   : > { %3318 = vtanh.f32 %v754_v20  ;;  %v757_v25 = vadd.f32 %v2809_v24, %v630_v60  ;;  %v748_v26 = vpop.f32.mrb[11].mxu1  ;;  %2830 = vmatprep.mubr.bf16.mxu0 %v792_v22 }
 0x2b3   : > { %3320 = vtanh.f32 %v746_v23  ;;  %v749_v27 = vadd.f32 %v748_v26, %v630_v60  ;;  %2831 = vmatmul.mubr.bf16.vlgmr.msra.gmra.mrb[16].mxu0 %v793_v19 }
 0x2b4   : > { %v3311_v28 = vpop.eup %3310  ;;  %3322 = vtanh.f32 %v757_v25 }
 0x2b5   : > { %v3313_v29 = vpop.eup %3312  ;;  %3324 = vtanh.f32 %v749_v27  ;;  %v3272_v27 = vld [vmem:[#allocation10 + $0x58] sm:$0xff]  }
 0x2b6   : > { %v3315_v30 = vpop.eup %3314 }
 0x2b7   : > { %v3317_v31 = vpop.eup %3316  ;;  %v2812_v32 = vpop.f32.mrb[12].mxu1  ;;  %v795_v33 = vpack.c.bf16 %v3315_v30, %v3311_v28  ;;  %v3273_v28 = vld [vmem:[#allocation10 + $0x60] sm:$0xff]   ;;  %v3275_v30 = vld [vmem:[#allocation10 + $0x70] sm:$0xff]  }
 0x2b8   : > { %v770_v34 = vadd.f32 %v2812_v32, %v630_v60  ;;  %v761_v35 = vpop.f32.mrb[13].mxu1  ;;  %v794_v36 = vpack.c.bf16 %v3317_v31, %v3313_v29  ;;  %v3274_v29 = vld [vmem:[#allocation10 + $0x68] sm:$0xff]   ;;  %v3276_v31 = vld [vmem:[#allocation10 + $0x78] sm:$0xff]   ;;  %v971_v32 = vsub.s32 1, %v4060_v57 }
 0x2b9   : > { %v762_v37 = vadd.f32 %v761_v35, %v630_v60  ;;  %v2813_v38 = vpop.f32.mrb[14].mxu1 }
 0x2ba   : > { %3326 = vtanh.f32 %v770_v34  ;;  %v773_v39 = vadd.f32 %v2813_v38, %v630_v60  ;;  %v764_v40 = vpop.f32.mrb[15].mxu1  ;;  %2834 = vmatprep.mubr.bf16.mxu0 %v794_v36 }
 0x2bb   : > { %3328 = vtanh.f32 %v762_v37  ;;  %v765_v41 = vadd.f32 %v764_v40, %v630_v60  ;;  %2835 = vmatmul.mubr.bf16.gmra.mrb[20].mxu0 %v795_v33  ;;  %v3269_v60 = vld [vmem:[#allocation10 + $0x40] sm:$0xff]   ;;  %v972_v33 = vrot.slane %v4066_v59, %v971_v32 }
 0x2bc   : > { %v3319_v42 = vpop.eup %3318  ;;  %3330 = vtanh.f32 %v773_v39  ;;  %2878 = vmatprep.subr.bf16.mxu0 %v3269_v60 }
 0x2bd   : > { %v3321_v43 = vpop.eup %3320  ;;  %3332 = vtanh.f32 %v765_v41  ;;  %2879 = vmatpush3.bf16.msra.mxu0 %v3269_v60 }
 0x2be   : > { %v3323_v51 = vpop.eup %3322  ;;  %2880 = vmatprep.subr.bf16.mxu0 %v3270_v0 }
 0x2bf   : > { %v3325_v52 = vpop.eup %3324  ;;  %v797_v53 = vpack.c.bf16 %v3323_v51, %v3319_v42 }
 0x2c0   : > { %v796_v54 = vpack.c.bf16 %v3325_v52, %v3321_v43 }
 0x2c1   : > { %2881 = vmatpush3.bf16.msra.mxu0 %v3270_v0 }
 0x2c2   : > { %2838 = vmatprep.mubr.bf16.mxu0 %v796_v54  ;;  %2882 = vmatprep.subr.bf16.mxu0 %v3271_v1 }
 0x2c3   : > { %2839 = vmatmul.mubr.bf16.gmra.mrb[24].mxu0 %v797_v53 }
 0x2c4   : > { %v3327_v55 = vpop.eup %3326 }
 0x2c5   : > { %v3329_v56 = vpop.eup %3328  ;;  %2883 = vmatpush3.bf16.msra.mxu0 %v3271_v1 }
 0x2c6   : > { %v3331_v58 = vpop.eup %3330  ;;  %2884 = vmatprep.subr.bf16.mxu0 %v3272_v27 }
 0x2c7   : > { %v3333_v61 = vpop.eup %3332  ;;  %v799_v62 = vpack.c.bf16 %v3331_v58, %v3327_v55 }
 0x2c8   : > { %v798_v63 = vpack.c.bf16 %v3333_v61, %v3329_v56 }
 0x2c9   : > { %2885 = vmatpush3.bf16.msra.mxu0 %v3272_v27 }
 0x2ca   : > { %2842 = vmatprep.mubr.bf16.mxu0 %v798_v63  ;;  %2886 = vmatprep.subr.bf16.mxu0 %v3273_v28 }
 0x2cb   : > { %2843 = vmatmul.mubr.bf16.gmra.mrb[28].mxu0 %v799_v62 }
 0x2cd   : > { %2887 = vmatpush3.bf16.msra.mxu0 %v3273_v28 }
 0x2ce   : > { %2888 = vmatprep.subr.bf16.mxu0 %v3274_v29 }
 0x2d1   : > { %2889 = vmatpush3.bf16.msra.mxu0 %v3274_v29 }
 0x2d2   : > { %2890 = vmatprep.subr.bf16.mxu0 %v3275_v30 }
 0x2d5   : > { %2891 = vmatpush3.bf16.msra.mxu0 %v3275_v30 }
 0x2d6   : > { %2892 = vmatprep.subr.bf16.mxu0 %v3276_v31 }
 0x2d9   : > { %2893 = vmatpush3.bf16.msra.mxu0 %v3276_v31 }
 0x386   : > { %v2832_v2 = vpop.f32.mrb[16].mxu0 }
 0x387   : > { %v898_v3 = vpop.f32.mrb[17].mxu0 }
 0x388   : > { %v2833_v4 = vpop.f32.mrb[18].mxu0 }
 0x389   : > { %v962_v5 = vpack.c.bf16 %v2833_v4, %v2832_v2  ;;  %v901_v6 = vpop.f32.mrb[19].mxu0 }
 0x38a   : > { %v961_v7 = vpack.c.bf16 %v901_v6, %v898_v3 }
 0x38c   : > { %2846 = vmatprep.subr.bf16.mxu1 %v961_v7 }
 0x38d   : > { %2847 = vmatpush3.bf16.msra.mxu1 %v961_v7 }
 0x38e   : > { %v2836_v8 = vpop.f32.mrb[20].mxu0  ;;  %2848 = vmatprep.subr.bf16.mxu1 %v962_v5 }
 0x38f   : > { %v914_v9 = vpop.f32.mrb[21].mxu0 }
 0x390   : > { %v2837_v10 = vpop.f32.mrb[22].mxu0 }
 0x391   : > { %v964_v11 = vpack.c.bf16 %v2837_v10, %v2836_v8  ;;  %v917_v12 = vpop.f32.mrb[23].mxu0  ;;  %2849 = vmatpush3.bf16.msra.mxu1 %v962_v5 }
 0x392   : > { %v963_v13 = vpack.c.bf16 %v917_v12, %v914_v9 }
 0x394   : > { %2850 = vmatprep.subr.bf16.mxu1 %v963_v13 }
 0x395   : > { %2851 = vmatpush3.bf16.msra.mxu1 %v963_v13 }
 0x396   : > { %v2840_v14 = vpop.f32.mrb[24].mxu0  ;;  %2852 = vmatprep.subr.bf16.mxu1 %v964_v11 }
 0x397   : > { %v930_v15 = vpop.f32.mrb[25].mxu0 }
 0x398   : > { %v2841_v17 = vpop.f32.mrb[26].mxu0 }
 0x399   : > { %v966_v18 = vpack.c.bf16 %v2841_v17, %v2840_v14  ;;  %v933_v19 = vpop.f32.mrb[27].mxu0  ;;  %2853 = vmatpush3.bf16.msra.mxu1 %v964_v11 }
 0x39a   : > { %v965_v20 = vpack.c.bf16 %v933_v19, %v930_v15 }
 0x39c   : > { %2854 = vmatprep.subr.bf16.mxu1 %v965_v20 }
 0x39d   : > { %2855 = vmatpush3.bf16.msra.mxu1 %v965_v20 }
 0x39e   : > { %v2844_v21 = vpop.f32.mrb[28].mxu0  ;;  %2856 = vmatprep.subr.bf16.mxu1 %v966_v18 }
 0x39f   : > { %v946_v22 = vpop.f32.mrb[29].mxu0 }
 0x3a0   : > { %v2845_v23 = vpop.f32.mrb[30].mxu0 }
 0x3a1   : > { %v968_v24 = vpack.c.bf16 %v2845_v23, %v2844_v21  ;;  %v949_v25 = vpop.f32.mrb[31].mxu0  ;;  %2857 = vmatpush3.bf16.msra.mxu1 %v966_v18 }
 0x3a2   : > { %v967_v26 = vpack.c.bf16 %v949_v25, %v946_v22 }
 0x3a4   : > { %2858 = vmatprep.subr.bf16.mxu1 %v967_v26 }
 0x3a5   : > { %2859 = vmatpush3.bf16.msra.mxu1 %v967_v26 }
 0x3a6   : > { %2860 = vmatprep.subr.bf16.mxu1 %v968_v24 }
 0x3a9   : > { %2861 = vmatpush3.bf16.msra.mxu1 %v968_v24 }
 0x3ac   : > { %2863 = vmatmul.mubr.bf16.vlgmr.msra.gmra.mrb[16].mxu1 %v4032_v44 }
 0x3ad   : > { %2866 = vmatprep.mubr.bf16.mxu1 %v4035_v45 }
 0x3b4   : > { %2867 = vmatmul.mubr.bf16.gmra.mrb[20].mxu1 %v4040_v46 }
 0x3b5   : > { %2870 = vmatprep.mubr.bf16.mxu1 %v4043_v47 }
 0x3bc   : > { %2871 = vmatmul.mubr.bf16.gmra.mrb[24].mxu1 %v4048_v48 }
 0x3bd   : > { %2874 = vmatprep.mubr.bf16.mxu1 %v4051_v49 }
 0x3c4   : > { %2875 = vmatmul.mubr.bf16.gmra.mrb[28].mxu1 %v4056_v50 }
 0x3c5   : > { %2926 = vmatprep.mubr.bf16.mxu1 %v4028_v16 }
 0x47f   : > { %v2864_v34 = vpop.f32.mrb[16].mxu1 }
 0x480   : > { %v1016_v35 = vadd.f32 %v2864_v34, %v972_v33  ;;  %v1007_v36 = vpop.f32.mrb[17].mxu1 }
 0x481   : > { %v1008_v37 = vadd.f32 %v1007_v36, %v972_v33  ;;  %v2865_v38 = vpop.f32.mrb[18].mxu1 }
 0x482   : > { %3334 = vtanh.f32 %v1016_v35  ;;  %v1019_v39 = vadd.f32 %v2865_v38, %v972_v33  ;;  %v1010_v40 = vpop.f32.mrb[19].mxu1  ;;  %v3279_v38 = vld [vmem:[#allocation10 + $0x90] sm:$0xff]  }
 0x483   : > { %3336 = vtanh.f32 %v1008_v37  ;;  %v1011_v41 = vadd.f32 %v1010_v40, %v972_v33  ;;  %v3278_v37 = vld [vmem:[#allocation10 + $0x88] sm:$0xff]   ;;  %v3281_v40 = vld [vmem:[#allocation10 + $0xa0] sm:$0xff]  }
 0x484   : > { %3338 = vtanh.f32 %v1019_v39  ;;  %v3280_v39 = vld [vmem:[#allocation10 + $0x98] sm:$0xff]  }
 0x485   : > { %3340 = vtanh.f32 %v1011_v41  ;;  %v3282_v41 = vld [vmem:[#allocation10 + $0xa8] sm:$0xff]  }
 0x487   : > { %v2868_v42 = vpop.f32.mrb[20].mxu1 }
 0x488   : > { %v1032_v43 = vadd.f32 %v2868_v42, %v972_v33  ;;  %v1023_v51 = vpop.f32.mrb[21].mxu1 }
 0x489   : > { %v1024_v52 = vadd.f32 %v1023_v51, %v972_v33  ;;  %v2869_v53 = vpop.f32.mrb[22].mxu1 }
 0x48a   : > { %3342 = vtanh.f32 %v1032_v43  ;;  %v1035_v54 = vadd.f32 %v2869_v53, %v972_v33  ;;  %v1026_v55 = vpop.f32.mrb[23].mxu1 }
 0x48b   : > { %3344 = vtanh.f32 %v1024_v52  ;;  %v1027_v56 = vadd.f32 %v1026_v55, %v972_v33 }
 0x48c   : > { %v3335_v58 = vpop.eup %3334  ;;  %3346 = vtanh.f32 %v1035_v54 }
 0x48d   : > { %v3337_v61 = vpop.eup %3336  ;;  %3348 = vtanh.f32 %v1027_v56 }
 0x48e   : > { %v3339_v62 = vpop.eup %3338 }
 0x48f   : > { %v3341_v63 = vpop.eup %3340  ;;  %v2872_v60 = vpop.f32.mrb[24].mxu1  ;;  %v1087_v0 = vpack.c.bf16 %v3339_v62, %v3335_v58 }
 0x490   : > { %v1048_v1 = vadd.f32 %v2872_v60, %v972_v33  ;;  %v1039_v2 = vpop.f32.mrb[25].mxu1  ;;  %v1086_v3 = vpack.c.bf16 %v3341_v63, %v3337_v61 }
 0x491   : > { %v1040_v4 = vadd.f32 %v1039_v2, %v972_v33  ;;  %v2873_v5 = vpop.f32.mrb[26].mxu1 }
 0x492   : > { %3350 = vtanh.f32 %v1048_v1  ;;  %v1051_v6 = vadd.f32 %v2873_v5, %v972_v33  ;;  %v1042_v7 = vpop.f32.mrb[27].mxu1  ;;  %2894 = vmatprep.mubr.bf16.mxu0 %v1086_v3 }
 0x493   : > { %3352 = vtanh.f32 %v1040_v4  ;;  %v1043_v8 = vadd.f32 %v1042_v7, %v972_v33  ;;  %2895 = vmatmul.mubr.bf16.vlgmr.msra.gmra.mrb[32].mxu0 %v1087_v0 }
 0x494   : > { %v3343_v9 = vpop.eup %3342  ;;  %3354 = vtanh.f32 %v1051_v6 }
 0x495   : > { %v3345_v10 = vpop.eup %3344  ;;  %3356 = vtanh.f32 %v1043_v8 }
 0x496   : > { %v3347_v11 = vpop.eup %3346 }
 0x497   : > { %v3349_v12 = vpop.eup %3348  ;;  %v2876_v13 = vpop.f32.mrb[28].mxu1  ;;  %v1089_v14 = vpack.c.bf16 %v3347_v11, %v3343_v9  ;;  %v3283_v11 = vld [vmem:[#allocation10 + $0xb0] sm:$0xff]  }
 0x498   : > { %v1064_v15 = vadd.f32 %v2876_v13, %v972_v33  ;;  %v1055_v17 = vpop.f32.mrb[29].mxu1  ;;  %v1088_v18 = vpack.c.bf16 %v3349_v12, %v3345_v10  ;;  %v3284_v12 = vld [vmem:[#allocation10 + $0xb8] sm:$0xff]   ;;  %v1265_v13 = vsub.s32 2, %v4060_v57 }
 0x499   : > { %v1056_v19 = vadd.f32 %v1055_v17, %v972_v33  ;;  %v2877_v20 = vpop.f32.mrb[30].mxu1 }
 0x49a   : > { %3358 = vtanh.f32 %v1064_v15  ;;  %v1067_v21 = vadd.f32 %v2877_v20, %v972_v33  ;;  %v1058_v22 = vpop.f32.mrb[31].mxu1  ;;  %2898 = vmatprep.mubr.bf16.mxu0 %v1088_v18 }
 0x49b   : > { %3360 = vtanh.f32 %v1056_v19  ;;  %v1059_v23 = vadd.f32 %v1058_v22, %v972_v33  ;;  %2899 = vmatmul.mubr.bf16.gmra.mrb[36].mxu0 %v1089_v14  ;;  %v3277_v33 = vld [vmem:[#allocation10 + $0x80] sm:$0xff]   ;;  %v1266_v14 = vrot.slane %v4066_v59, %v1265_v13 }
 0x49c   : > { %v3351_v24 = vpop.eup %3350  ;;  %3362 = vtanh.f32 %v1067_v21  ;;  %2942 = vmatprep.subr.bf16.mxu0 %v3277_v33 }
 0x49d   : > { %v3353_v25 = vpop.eup %3352  ;;  %3364 = vtanh.f32 %v1059_v23  ;;  %2943 = vmatpush3.bf16.msra.mxu0 %v3277_v33 }
 0x49e   : > { %v3355_v26 = vpop.eup %3354  ;;  %2944 = vmatprep.subr.bf16.mxu0 %v3278_v37 }
 0x49f   : > { %v3357_v27 = vpop.eup %3356  ;;  %v1091_v28 = vpack.c.bf16 %v3355_v26, %v3351_v24 }
 0x4a0   : > { %v1090_v29 = vpack.c.bf16 %v3357_v27, %v3353_v25 }
 0x4a1   : > { %2945 = vmatpush3.bf16.msra.mxu0 %v3278_v37 }
 0x4a2   : > { %2902 = vmatprep.mubr.bf16.mxu0 %v1090_v29  ;;  %2946 = vmatprep.subr.bf16.mxu0 %v3279_v38 }
 0x4a3   : > { %2903 = vmatmul.mubr.bf16.gmra.mrb[40].mxu0 %v1091_v28 }
 0x4a4   : > { %v3359_v30 = vpop.eup %3358 }
 0x4a5   : > { %v3361_v31 = vpop.eup %3360  ;;  %2947 = vmatpush3.bf16.msra.mxu0 %v3279_v38 }
 0x4a6   : > { %v3363_v32 = vpop.eup %3362  ;;  %2948 = vmatprep.subr.bf16.mxu0 %v3280_v39 }
 0x4a7   : > { %v3365_v34 = vpop.eup %3364  ;;  %v1093_v35 = vpack.c.bf16 %v3363_v32, %v3359_v30 }
 0x4a8   : > { %v1092_v36 = vpack.c.bf16 %v3365_v34, %v3361_v31 }
 0x4a9   : > { %2949 = vmatpush3.bf16.msra.mxu0 %v3280_v39 }
 0x4aa   : > { %2906 = vmatprep.mubr.bf16.mxu0 %v1092_v36  ;;  %2950 = vmatprep.subr.bf16.mxu0 %v3281_v40 }
 0x4ab   : > { %2907 = vmatmul.mubr.bf16.gmra.mrb[44].mxu0 %v1093_v35 }
 0x4ad   : > { %2951 = vmatpush3.bf16.msra.mxu0 %v3281_v40 }
 0x4ae   : > { %2952 = vmatprep.subr.bf16.mxu0 %v3282_v41 }
 0x4b1   : > { %2953 = vmatpush3.bf16.msra.mxu0 %v3282_v41 }
 0x4b2   : > { %2954 = vmatprep.subr.bf16.mxu0 %v3283_v11 }
 0x4b5   : > { %2955 = vmatpush3.bf16.msra.mxu0 %v3283_v11 }
 0x4b6   : > { %2956 = vmatprep.subr.bf16.mxu0 %v3284_v12 }
 0x4b9   : > { %2957 = vmatpush3.bf16.msra.mxu0 %v3284_v12 }
 0x566   : > { %v2896_v42 = vpop.f32.mrb[32].mxu0 }
 0x567   : > { %v1192_v43 = vpop.f32.mrb[33].mxu0 }
 0x568   : > { %v2897_v51 = vpop.f32.mrb[34].mxu0 }
 0x569   : > { %v1256_v52 = vpack.c.bf16 %v2897_v51, %v2896_v42  ;;  %v1195_v53 = vpop.f32.mrb[35].mxu0 }
 0x56a   : > { %v1255_v54 = vpack.c.bf16 %v1195_v53, %v1192_v43 }
 0x56c   : > { %2910 = vmatprep.subr.bf16.mxu1 %v1255_v54 }
 0x56d   : > { %2911 = vmatpush3.bf16.msra.mxu1 %v1255_v54 }
 0x56e   : > { %v2900_v55 = vpop.f32.mrb[36].mxu0  ;;  %2912 = vmatprep.subr.bf16.mxu1 %v1256_v52 }
 0x56f   : > { %v1208_v56 = vpop.f32.mrb[37].mxu0 }
 0x570   : > { %v2901_v58 = vpop.f32.mrb[38].mxu0 }
 0x571   : > { %v1258_v61 = vpack.c.bf16 %v2901_v58, %v2900_v55  ;;  %v1211_v62 = vpop.f32.mrb[39].mxu0  ;;  %2913 = vmatpush3.bf16.msra.mxu1 %v1256_v52 }
 0x572   : > { %v1257_v63 = vpack.c.bf16 %v1211_v62, %v1208_v56 }
 0x574   : > { %2914 = vmatprep.subr.bf16.mxu1 %v1257_v63 }
 0x575   : > { %2915 = vmatpush3.bf16.msra.mxu1 %v1257_v63 }
 0x576   : > { %v2904_v60 = vpop.f32.mrb[40].mxu0  ;;  %2916 = vmatprep.subr.bf16.mxu1 %v1258_v61 }
 0x577   : > { %v1224_v0 = vpop.f32.mrb[41].mxu0 }
 0x578   : > { %v2905_v1 = vpop.f32.mrb[42].mxu0 }
 0x579   : > { %v1260_v2 = vpack.c.bf16 %v2905_v1, %v2904_v60  ;;  %v1227_v3 = vpop.f32.mrb[43].mxu0  ;;  %2917 = vmatpush3.bf16.msra.mxu1 %v1258_v61  ;;  %v3285_v1 = vld [vmem:[#allocation10 + $0xc0] sm:$0xff]  }
 0x57a   : > { %v1259_v4 = vpack.c.bf16 %v1227_v3, %v1224_v0  ;;  %3006 = vmatprep.subr.bf16.mxu0 %v3285_v1  ;;  %v3287_v3 = vld [vmem:[#allocation10 + $0xd0] sm:$0xff]  }
 0x57c   : > { %2918 = vmatprep.subr.bf16.mxu1 %v1259_v4 }
 0x57d   : > { %2919 = vmatpush3.bf16.msra.mxu1 %v1259_v4 }
 0x57e   : > { %v2908_v5 = vpop.f32.mrb[44].mxu0  ;;  %2920 = vmatprep.subr.bf16.mxu1 %v1260_v2 }
 0x57f   : > { %v1240_v6 = vpop.f32.mrb[45].mxu0 }
 0x580   : > { %v2909_v7 = vpop.f32.mrb[46].mxu0 }
 0x581   : > { %v1262_v8 = vpack.c.bf16 %v2909_v7, %v2908_v5  ;;  %v1243_v9 = vpop.f32.mrb[47].mxu0  ;;  %2921 = vmatpush3.bf16.msra.mxu1 %v1260_v2  ;;  %v3286_v2 = vld [vmem:[#allocation10 + $0xc8] sm:$0xff]  }
 0x582   : > { %v1261_v10 = vpack.c.bf16 %v1243_v9, %v1240_v6 }
 0x584   : > { %2922 = vmatprep.subr.bf16.mxu1 %v1261_v10 }
 0x585   : > { %2923 = vmatpush3.bf16.msra.mxu1 %v1261_v10 }
 0x586   : > { %2924 = vmatprep.subr.bf16.mxu1 %v1262_v8 }
 0x589   : > { %2925 = vmatpush3.bf16.msra.mxu1 %v1262_v8 }
 0x58c   : > { %2927 = vmatmul.mubr.bf16.vlgmr.msra.gmra.mrb[32].mxu1 %v4032_v44 }
 0x58d   : > { %2930 = vmatprep.mubr.bf16.mxu1 %v4035_v45 }
 0x594   : > { %2931 = vmatmul.mubr.bf16.gmra.mrb[36].mxu1 %v4040_v46 }
 0x595   : > { %2934 = vmatprep.mubr.bf16.mxu1 %v4043_v47 }
 0x59c   : > { %2935 = vmatmul.mubr.bf16.gmra.mrb[40].mxu1 %v4048_v48 }
 0x59d   : > { %2938 = vmatprep.mubr.bf16.mxu1 %v4051_v49 }
 0x5a4   : > { %2939 = vmatmul.mubr.bf16.gmra.mrb[44].mxu1 %v4056_v50 }
 0x5a5   : > { %2990 = vmatprep.mubr.bf16.mxu1 %v4028_v16 }
 0x65f   : > { %v2928_v15 = vpop.f32.mrb[32].mxu1 }
 0x660   : > { %v1301_v17 = vpop.f32.mrb[33].mxu1  ;;  %v1310_v19 = vadd.f32 %v2928_v15, %v1266_v14 }
 0x661   : > { %v2929_v18 = vpop.f32.mrb[34].mxu1  ;;  %v1302_v22 = vadd.f32 %v1301_v17, %v1266_v14 }
 0x662   : > { %v1313_v20 = vadd.f32 %v2929_v18, %v1266_v14  ;;  %v1304_v21 = vpop.f32.mrb[35].mxu1 }
 0x663   : > { %v1305_v23 = vadd.f32 %v1304_v21, %v1266_v14 }
 0x664   : > { %v1365_v24 = vpack.c.bf16 %v1313_v20, %v1310_v19 }
 0x665   : > { %v1364_v25 = vpack.c.bf16 %v1305_v23, %v1302_v22 }
 0x667   : > { %v2932_v26 = vpop.f32.mrb[36].mxu1  ;;  %2958 = vmatprep.mubr.bf16.mxu0 %v1364_v25 }
 0x668   : > { %v1317_v27 = vpop.f32.mrb[37].mxu1  ;;  %2959 = vmatmul.mubr.bf16.vlgmr.msra.gmra.mrb[48].mxu0 %v1365_v24  ;;  %v1326_v29 = vadd.f32 %v2932_v26, %v1266_v14 }
 0x669   : > { %v2933_v28 = vpop.f32.mrb[38].mxu1  ;;  %v1318_v32 = vadd.f32 %v1317_v27, %v1266_v14  ;;  %3007 = vmatpush3.bf16.msra.mxu0 %v3285_v1 }
 0x66a   : > { %v1329_v30 = vadd.f32 %v2933_v28, %v1266_v14  ;;  %v1320_v31 = vpop.f32.mrb[39].mxu1  ;;  %3008 = vmatprep.subr.bf16.mxu0 %v3286_v2 }
 0x66b   : > { %v1321_v34 = vadd.f32 %v1320_v31, %v1266_v14 }
 0x66c   : > { %v1367_v35 = vpack.c.bf16 %v1329_v30, %v1326_v29  ;;  %v3288_v29 = vld [vmem:[#allocation10 + $0xd8] sm:$0xff]   ;;  %v3289_v30 = vld [vmem:[#allocation10 + $0xe0] sm:$0xff]  }
 0x66d   : > { %v1366_v36 = vpack.c.bf16 %v1321_v34, %v1318_v32  ;;  %3009 = vmatpush3.bf16.msra.mxu0 %v3286_v2 }
 0x66e   : > { %3010 = vmatprep.subr.bf16.mxu0 %v3287_v3 }
 0x66f   : > { %v2936_v33 = vpop.f32.mrb[40].mxu1  ;;  %2962 = vmatprep.mubr.bf16.mxu0 %v1366_v36 }
 0x670   : > { %v1333_v37 = vpop.f32.mrb[41].mxu1  ;;  %2963 = vmatmul.mubr.bf16.gmra.mrb[52].mxu0 %v1367_v35  ;;  %v1342_v39 = vadd.f32 %v2936_v33, %v1266_v14 }
 0x671   : > { %v2937_v38 = vpop.f32.mrb[42].mxu1  ;;  %v1334_v42 = vadd.f32 %v1333_v37, %v1266_v14  ;;  %3011 = vmatpush3.bf16.msra.mxu0 %v3287_v3 }
 0x672   : > { %v1345_v40 = vadd.f32 %v2937_v38, %v1266_v14  ;;  %v1336_v41 = vpop.f32.mrb[43].mxu1  ;;  %3012 = vmatprep.subr.bf16.mxu0 %v3288_v29 }
 0x673   : > { %v1337_v43 = vadd.f32 %v1336_v41, %v1266_v14 }
 0x674   : > { %v1369_v51 = vpack.c.bf16 %v1345_v40, %v1342_v39 }
 0x675   : > { %v1368_v52 = vpack.c.bf16 %v1337_v43, %v1334_v42  ;;  %3013 = vmatpush3.bf16.msra.mxu0 %v3288_v29  ;;  %v3293_v29 = vld [vmem:[#allocation10 + $0x100] sm:$0xff]  }
 0x676   : > { %3014 = vmatprep.subr.bf16.mxu0 %v3289_v30 }
 0x677   : > { %v2940_v53 = vpop.f32.mrb[44].mxu1  ;;  %2966 = vmatprep.mubr.bf16.mxu0 %v1368_v52 }
 0x678   : > { %v1349_v54 = vpop.f32.mrb[45].mxu1  ;;  %2967 = vmatmul.mubr.bf16.gmra.mrb[56].mxu0 %v1369_v51  ;;  %v1358_v56 = vadd.f32 %v2940_v53, %v1266_v14 }
 0x679   : > { %v2941_v55 = vpop.f32.mrb[46].mxu1  ;;  %v1350_v62 = vadd.f32 %v1349_v54, %v1266_v14  ;;  %3015 = vmatpush3.bf16.msra.mxu0 %v3289_v30  ;;  %v3294_v30 = vld [vmem:[#allocation10 + $0x108] sm:$0xff]  }
 0x67a   : > { %v1361_v58 = vadd.f32 %v2941_v55, %v1266_v14  ;;  %v1352_v61 = vpop.f32.mrb[47].mxu1 }
 0x67b   : > { %v1353_v63 = vadd.f32 %v1352_v61, %v1266_v14 }
 0x67c   : > { %v1371_v60 = vpack.c.bf16 %v1361_v58, %v1358_v56 }
 0x67d   : > { %v1370_v0 = vpack.c.bf16 %v1353_v63, %v1350_v62 }
 0x67f   : > { %2970 = vmatprep.mubr.bf16.mxu0 %v1370_v0 }
 0x680   : > { %2971 = vmatmul.mubr.bf16.gmra.mrb[60].mxu0 %v1371_v60 }
 0x73b   : > { %v2960_v4 = vpop.f32.mrb[48].mxu0 }
 0x73c   : > { %v1470_v5 = vpop.f32.mrb[49].mxu0 }
 0x73d   : > { %v2961_v6 = vpop.f32.mrb[50].mxu0 }
 0x73e   : > { %v1534_v7 = vpack.c.bf16 %v2961_v6, %v2960_v4  ;;  %v1473_v8 = vpop.f32.mrb[51].mxu0 }
 0x73f   : > { %v1533_v9 = vpack.c.bf16 %v1473_v8, %v1470_v5 }
 0x741   : > { %2974 = vmatprep.subr.bf16.mxu1 %v1533_v9 }
 0x742   : > { %2975 = vmatpush3.bf16.msra.mxu1 %v1533_v9 }
 0x743   : > { %v2964_v10 = vpop.f32.mrb[52].mxu0  ;;  %2976 = vmatprep.subr.bf16.mxu1 %v1534_v7 }
 0x744   : > { %v1486_v11 = vpop.f32.mrb[53].mxu0 }
 0x745   : > { %v2965_v12 = vpop.f32.mrb[54].mxu0 }
 0x746   : > { %v1536_v13 = vpack.c.bf16 %v2965_v12, %v2964_v10  ;;  %v1489_v14 = vpop.f32.mrb[55].mxu0  ;;  %2977 = vmatpush3.bf16.msra.mxu1 %v1534_v7 }
 0x747   : > { %v1535_v15 = vpack.c.bf16 %v1489_v14, %v1486_v11 }
 0x749   : > { %2978 = vmatprep.subr.bf16.mxu1 %v1535_v15 }
 0x74a   : > { %2979 = vmatpush3.bf16.msra.mxu1 %v1535_v15 }
 0x74b   : > { %v2968_v17 = vpop.f32.mrb[56].mxu0  ;;  %2980 = vmatprep.subr.bf16.mxu1 %v1536_v13 }
 0x74c   : > { %v1502_v18 = vpop.f32.mrb[57].mxu0 }
 0x74d   : > { %v2969_v19 = vpop.f32.mrb[58].mxu0 }
 0x74e   : > { %v1538_v20 = vpack.c.bf16 %v2969_v19, %v2968_v17  ;;  %v1505_v21 = vpop.f32.mrb[59].mxu0  ;;  %2981 = vmatpush3.bf16.msra.mxu1 %v1536_v13 }
 0x74f   : > { %v1537_v22 = vpack.c.bf16 %v1505_v21, %v1502_v18 }
 0x751   : > { %2982 = vmatprep.subr.bf16.mxu1 %v1537_v22 }
 0x752   : > { %2983 = vmatpush3.bf16.msra.mxu1 %v1537_v22 }
 0x753   : > { %v2972_v23 = vpop.f32.mrb[60].mxu0  ;;  %2984 = vmatprep.subr.bf16.mxu1 %v1538_v20 }
 0x754   : > { %v1518_v24 = vpop.f32.mrb[61].mxu0 }
 0x755   : > { %v2973_v25 = vpop.f32.mrb[62].mxu0 }
 0x756   : > { %v1540_v26 = vpack.c.bf16 %v2973_v25, %v2972_v23  ;;  %v1521_v27 = vpop.f32.mrb[63].mxu0  ;;  %2985 = vmatpush3.bf16.msra.mxu1 %v1538_v20 }
 0x757   : > { %v1539_v28 = vpack.c.bf16 %v1521_v27, %v1518_v24 }
 0x759   : > { %2986 = vmatprep.subr.bf16.mxu1 %v1539_v28 }
 0x75a   : > { %2987 = vmatpush3.bf16.msra.mxu1 %v1539_v28 }
 0x75b   : > { %2988 = vmatprep.subr.bf16.mxu1 %v1540_v26 }
 0x75e   : > { %2989 = vmatpush3.bf16.msra.mxu1 %v1540_v26 }
 0x761   : > { %2991 = vmatmul.mubr.bf16.vlgmr.msra.gmra.mrb[48].mxu1 %v4032_v44  ;;  %v3290_v44 = vld [vmem:[#allocation10 + $0xe8] sm:$0xff]  }
 0x762   : > { %2994 = vmatprep.mubr.bf16.mxu1 %v4035_v45  ;;  %3016 = vmatprep.subr.bf16.mxu0 %v3290_v44  ;;  %v3291_v45 = vld [vmem:[#allocation10 + $0xf0] sm:$0xff]  }
 0x763   : > { %3017 = vmatpush3.bf16.msra.mxu0 %v3290_v44  ;;  %v3295_v44 = vld [vmem:[#allocation10 + $0x110] sm:$0xff]  }
 0x764   : > { %3018 = vmatprep.subr.bf16.mxu0 %v3291_v45 }
 0x767   : > { %3019 = vmatpush3.bf16.msra.mxu0 %v3291_v45 }
 0x769   : > { %2995 = vmatmul.mubr.bf16.gmra.mrb[52].mxu1 %v4040_v46  ;;  %v3292_v46 = vld [vmem:[#allocation10 + $0xf8] sm:$0xff]  }
 0x76a   : > { %2998 = vmatprep.mubr.bf16.mxu1 %v4043_v47  ;;  %3020 = vmatprep.subr.bf16.mxu0 %v3292_v46  ;;  %v1543_v47 = vsub.s32 3, %v4060_v57 }
 0x76b   : > { %3021 = vmatpush3.bf16.msra.mxu0 %v3292_v46 }
 0x76c   : > { %3070 = vmatprep.subr.bf16.mxu0 %v3293_v29 }
 0x771   : > { %2999 = vmatmul.mubr.bf16.gmra.mrb[56].mxu1 %v4048_v48  ;;  %v1544_v48 = vrot.slane %v4066_v59, %v1543_v47 }
 0x772   : > { %3002 = vmatprep.mubr.bf16.mxu1 %v4051_v49 }
 0x779   : > { %3003 = vmatmul.mubr.bf16.gmra.mrb[60].mxu1 %v4056_v50 }
 0x77a   : > { %3054 = vmatprep.mubr.bf16.mxu1 %v4028_v16 }
 0x834   : > { %v2992_v16 = vpop.f32.mrb[48].mxu1 }
 0x835   : > { %v1588_v49 = vadd.f32 %v2992_v16, %v1544_v48  ;;  %v1579_v50 = vpop.f32.mrb[49].mxu1 }
 0x836   : > { %v1580_v31 = vadd.f32 %v1579_v50, %v1544_v48  ;;  %v2993_v32 = vpop.f32.mrb[50].mxu1 }
 0x837   : > { %3366 = vtanh.f32 %v1588_v49  ;;  %v1591_v34 = vadd.f32 %v2993_v32, %v1544_v48  ;;  %v1582_v35 = vpop.f32.mrb[51].mxu1 }
 0x838   : > { %3368 = vtanh.f32 %v1580_v31  ;;  %v1583_v36 = vadd.f32 %v1582_v35, %v1544_v48 }
 0x839   : > { %3370 = vtanh.f32 %v1591_v34 }
 0x83a   : > { %3372 = vtanh.f32 %v1583_v36 }
 0x83c   : > { %v2996_v33 = vpop.f32.mrb[52].mxu1 }
 0x83d   : > { %v1604_v37 = vadd.f32 %v2996_v33, %v1544_v48  ;;  %v1595_v38 = vpop.f32.mrb[53].mxu1 }
 0x83e   : > { %v1596_v39 = vadd.f32 %v1595_v38, %v1544_v48  ;;  %v2997_v40 = vpop.f32.mrb[54].mxu1 }
 0x83f   : > { %3374 = vtanh.f32 %v1604_v37  ;;  %v1607_v41 = vadd.f32 %v2997_v40, %v1544_v48  ;;  %v1598_v59 = vpop.f32.mrb[55].mxu1 }
 0x840   : > { %3376 = vtanh.f32 %v1596_v39  ;;  %v1599_v42 = vadd.f32 %v1598_v59, %v1544_v48 }
 0x841   : > { %v3367_v43 = vpop.eup %3366  ;;  %3378 = vtanh.f32 %v1607_v41 }
 0x842   : > { %v3369_v51 = vpop.eup %3368  ;;  %3380 = vtanh.f32 %v1599_v42 }
 0x843   : > { %v3371_v52 = vpop.eup %3370 }
 0x844   : > { %v3373_v53 = vpop.eup %3372  ;;  %v3000_v54 = vpop.f32.mrb[56].mxu1  ;;  %v1659_v55 = vpack.c.bf16 %v3371_v52, %v3367_v43 }
 0x845   : > { %v1620_v56 = vadd.f32 %v3000_v54, %v1544_v48  ;;  %v1611_v58 = vpop.f32.mrb[57].mxu1  ;;  %v1658_v61 = vpack.c.bf16 %v3373_v53, %v3369_v51  ;;  %v4100_v54 = vld [vmem:[%s3999_s14 + $0x8] sm:$0xff]  }
 0x846   : > { %v1612_v62 = vadd.f32 %v1611_v58, %v1544_v48  ;;  %v3001_v63 = vpop.f32.mrb[58].mxu1  ;;  %v4112_v58 = vld [vmem:[%s3999_s14 + $0x20] sm:$0xff]  }
 0x847   : > { %3382 = vtanh.f32 %v1620_v56  ;;  %v1623_v60 = vadd.f32 %v3001_v63, %v1544_v48  ;;  %v1614_v0 = vpop.f32.mrb[59].mxu1  ;;  %3022 = vmatprep.mubr.bf16.mxu0 %v1658_v61  ;;  %v4108_v56 = vld [vmem:[%s3999_s14 + $0x18] sm:$0xff]   ;;  %v4116_v61 = vld [vmem:[%s3999_s14 + $0x28] sm:$0xff]  }
 0x848   : > { %3384 = vtanh.f32 %v1612_v62  ;;  %v1615_v1 = vadd.f32 %v1614_v0, %v1544_v48  ;;  %3023 = vmatmul.mubr.bf16.vlgmr.msra.gmra.mrb[64].mxu0 %v1659_v55  ;;  %v4104_v55 = vld [vmem:[%s3999_s14 + $0x10] sm:$0xff]   ;;  %v4124_v63 = vld [vmem:[%s3999_s14 + $0x38] sm:$0xff]   ;;  %v3296_v0 = vld [vmem:[#allocation10 + $0x118] sm:$0xff]  }
 0x849   : > { %v3375_v2 = vpop.eup %3374  ;;  %3386 = vtanh.f32 %v1623_v60  ;;  %3071 = vmatpush3.bf16.msra.mxu0 %v3293_v29  ;;  %v4120_v62 = vld [vmem:[%s3999_s14 + $0x30] sm:$0xff]   ;;  %v3469_v60 = vld [vmem:[%s3999_s14] sm:$0xff]   ;;  %s3623_s14 = scalar_lea.vmem %s3622_s10, 512 }
 0x84a   : > { %v3377_v3 = vpop.eup %3376  ;;  %3388 = vtanh.f32 %v1615_v1  ;;  %3072 = vmatprep.subr.bf16.mxu0 %v3294_v30  ;;  %v3297_v1 = vld [vmem:[#allocation10 + $0x120] sm:$0xff]   ;;  %p3625_p9 = scmp.lt.s32.totalorder %s3623_s14, %s3617_s1 }
 0x84b   : > { %v3379_v4 = vpop.eup %3378 }
 0x84c   : > { %v3381_v5 = vpop.eup %3380  ;;  %v3004_v6 = vpop.f32.mrb[60].mxu1  ;;  %v1661_v7 = vpack.c.bf16 %v3379_v4, %v3375_v2  ;;  %v3298_v2 = vld [vmem:[#allocation10 + $0x128] sm:$0xff]   ;;  %v3300_v4 = vld [vmem:[#allocation10 + $0x138] sm:$0xff]   ;;  %p3626_p10 = por %p3625_p9, %p3624_p8 }
 0x84d   : > { %v1636_v8 = vadd.f32 %v3004_v6, %v1544_v48  ;;  %v1627_v9 = vpop.f32.mrb[61].mxu1  ;;  %v1660_v10 = vpack.c.bf16 %v3381_v5, %v3377_v3  ;;  %3073 = vmatpush3.bf16.msra.mxu0 %v3294_v30  ;;  %v3299_v3 = vld [vmem:[#allocation10 + $0x130] sm:$0xff]   ;;  %v1837_v5 = vsub.s32 4, %v4060_v57 }
 0x84e   : > { %v1628_v11 = vadd.f32 %v1627_v9, %v1544_v48  ;;  %v3005_v12 = vpop.f32.mrb[62].mxu1  ;;  %3074 = vmatprep.subr.bf16.mxu0 %v3295_v44  ;;  %v4132_v6 = vld [vmem:[%s4228_s5] sm:$0x3f]  ;;  %p3627_p1 = pnand %p3626_p10, %p3620_p6 }
 0x84f   : > { %3390 = vtanh.f32 %v1636_v8  ;;  %v1639_v13 = vadd.f32 %v3005_v12, %v1544_v48  ;;  %v1630_v14 = vpop.f32.mrb[63].mxu1  ;;  %3026 = vmatprep.mubr.bf16.mxu0 %v1660_v10 }
 0x850   : > { %3392 = vtanh.f32 %v1628_v11  ;;  %v1631_v15 = vadd.f32 %v1630_v14, %v1544_v48  ;;  %3027 = vmatmul.mubr.bf16.gmra.mrb[68].mxu0 %v1661_v7  ;;  %v1838_v7 = vrot.slane %v4132_v6, %v1837_v5 }
 0x851   : > { %v3383_v17 = vpop.eup %3382  ;;  %3394 = vtanh.f32 %v1639_v13  ;;  %3075 = vmatpush3.bf16.msra.mxu0 %v3295_v44 }
 0x852   : > { %v3385_v18 = vpop.eup %3384  ;;  %3396 = vtanh.f32 %v1631_v15  ;;  %3076 = vmatprep.subr.bf16.mxu0 %v3296_v0 }
 0x853   : > { %v3387_v19 = vpop.eup %3386 }
 0x854   : > { %v3389_v20 = vpop.eup %3388  ;;  %v1663_v21 = vpack.c.bf16 %v3387_v19, %v3383_v17 }
 0x855   : > { %v1662_v22 = vpack.c.bf16 %v3389_v20, %v3385_v18  ;;  %3077 = vmatpush3.bf16.msra.mxu0 %v3296_v0 }
 0x856   : > { %3078 = vmatprep.subr.bf16.mxu0 %v3297_v1 }
 0x857   : > { %3030 = vmatprep.mubr.bf16.mxu0 %v1662_v22 }
 0x858   : > { %3031 = vmatmul.mubr.bf16.gmra.mrb[72].mxu0 %v1663_v21 }
 0x859   : > { %v3391_v23 = vpop.eup %3390  ;;  %3079 = vmatpush3.bf16.msra.mxu0 %v3297_v1 }
 0x85a   : > { %v3393_v24 = vpop.eup %3392  ;;  %3080 = vmatprep.subr.bf16.mxu0 %v3298_v2 }
 0x85b   : > { %v3395_v25 = vpop.eup %3394 }
 0x85c   : > { %v3397_v26 = vpop.eup %3396  ;;  %v1665_v27 = vpack.c.bf16 %v3395_v25, %v3391_v23 }
 0x85d   : > { %v1664_v28 = vpack.c.bf16 %v3397_v26, %v3393_v24  ;;  %3081 = vmatpush3.bf16.msra.mxu0 %v3298_v2 }
 0x85e   : > { %3082 = vmatprep.subr.bf16.mxu0 %v3299_v3 }
 0x85f   : > { %3034 = vmatprep.mubr.bf16.mxu0 %v1664_v28 }
 0x860   : > { %3035 = vmatmul.mubr.bf16.gmra.mrb[76].mxu0 %v1665_v27 }
 0x861   : > { %3083 = vmatpush3.bf16.msra.mxu0 %v3299_v3 }
 0x862   : > { %3084 = vmatprep.subr.bf16.mxu0 %v3300_v4 }
 0x865   : > { %3085 = vmatpush3.bf16.msra.mxu0 %v3300_v4 }
 0x91b   : > { %v3024_v45 = vpop.f32.mrb[64].mxu0 }
 0x91c   : > { %v1764_v46 = vpop.f32.mrb[65].mxu0 }
 0x91d   : > { %v3025_v47 = vpop.f32.mrb[66].mxu0 }
 0x91e   : > { %v1828_v48 = vpack.c.bf16 %v3025_v47, %v3024_v45  ;;  %v1767_v16 = vpop.f32.mrb[67].mxu0 }
 0x91f   : > { %v1827_v49 = vpack.c.bf16 %v1767_v16, %v1764_v46 }
 0x921   : > { %3038 = vmatprep.subr.bf16.mxu1 %v1827_v49 }
 0x922   : > { %3039 = vmatpush3.bf16.msra.mxu1 %v1827_v49 }
 0x923   : > { %v3028_v50 = vpop.f32.mrb[68].mxu0  ;;  %3040 = vmatprep.subr.bf16.mxu1 %v1828_v48 }
 0x924   : > { %v1780_v31 = vpop.f32.mrb[69].mxu0 }
 0x925   : > { %v3029_v32 = vpop.f32.mrb[70].mxu0 }
 0x926   : > { %v1830_v34 = vpack.c.bf16 %v3029_v32, %v3028_v50  ;;  %v1783_v35 = vpop.f32.mrb[71].mxu0  ;;  %3041 = vmatpush3.bf16.msra.mxu1 %v1828_v48 }
 0x927   : > { %v1829_v36 = vpack.c.bf16 %v1783_v35, %v1780_v31 }
 0x929   : > { %3042 = vmatprep.subr.bf16.mxu1 %v1829_v36 }
 0x92a   : > { %3043 = vmatpush3.bf16.msra.mxu1 %v1829_v36 }
 0x92b   : > { %v3032_v33 = vpop.f32.mrb[72].mxu0  ;;  %3044 = vmatprep.subr.bf16.mxu1 %v1830_v34 }
 0x92c   : > { %v1796_v37 = vpop.f32.mrb[73].mxu0 }
 0x92d   : > { %v3033_v38 = vpop.f32.mrb[74].mxu0 }
 0x92e   : > { %v1832_v39 = vpack.c.bf16 %v3033_v38, %v3032_v33  ;;  %v1799_v40 = vpop.f32.mrb[75].mxu0  ;;  %3045 = vmatpush3.bf16.msra.mxu1 %v1830_v34 }
 0x92f   : > { %v1831_v41 = vpack.c.bf16 %v1799_v40, %v1796_v37 }
 0x931   : > { %3046 = vmatprep.subr.bf16.mxu1 %v1831_v41 }
 0x932   : > { %3047 = vmatpush3.bf16.msra.mxu1 %v1831_v41 }
 0x933   : > { %v3036_v59 = vpop.f32.mrb[76].mxu0  ;;  %3048 = vmatprep.subr.bf16.mxu1 %v1832_v39 }
 0x934   : > { %v1812_v42 = vpop.f32.mrb[77].mxu0 }
 0x935   : > { %v3037_v43 = vpop.f32.mrb[78].mxu0 }
 0x936   : > { %v1834_v51 = vpack.c.bf16 %v3037_v43, %v3036_v59  ;;  %v1815_v52 = vpop.f32.mrb[79].mxu0  ;;  %3049 = vmatpush3.bf16.msra.mxu1 %v1832_v39 }
 0x937   : > { %v1833_v53 = vpack.c.bf16 %v1815_v52, %v1812_v42 }
 0x939   : > { %3050 = vmatprep.subr.bf16.mxu1 %v1833_v53 }
 0x93a   : > { %3051 = vmatpush3.bf16.msra.mxu1 %v1833_v53 }
 0x93b   : > { %3052 = vmatprep.subr.bf16.mxu1 %v1834_v51 }
 0x93e   : > { %3053 = vmatpush3.bf16.msra.mxu1 %v1834_v51 }
 0x941   : > { %3055 = vmatmul.mubr.bf16.vlgmr.msra.gmra.mrb[64].mxu1 %v4100_v54 }
 0x942   : > { %3058 = vmatprep.mubr.bf16.mxu1 %v4104_v55 }
 0x949   : > { %3059 = vmatmul.mubr.bf16.gmra.mrb[68].mxu1 %v4108_v56 }
 0x94a   : > { %3062 = vmatprep.mubr.bf16.mxu1 %v4112_v58 }
 0x951   : > { %3063 = vmatmul.mubr.bf16.gmra.mrb[72].mxu1 %v4116_v61 }
 0x952   : > { %3066 = vmatprep.mubr.bf16.mxu1 %v4120_v62 }
 0x959   : > { %3067 = vmatmul.mubr.bf16.gmra.mrb[76].mxu1 %v4124_v63 }
 0x95a   : > { %3118 = vmatprep.mubr.bf16.mxu1 %v3469_v60 }
 0xa14   : > { %v3056_v8 = vpop.f32.mrb[64].mxu1 }
 0xa15   : > { %v1882_v9 = vadd.f32 %v3056_v8, %v1838_v7  ;;  %v1873_v10 = vpop.f32.mrb[65].mxu1 }
 0xa16   : > { %v1874_v11 = vadd.f32 %v1873_v10, %v1838_v7  ;;  %v3057_v12 = vpop.f32.mrb[66].mxu1 }
 0xa17   : > { %3398 = vtanh.f32 %v1882_v9  ;;  %v1885_v13 = vadd.f32 %v3057_v12, %v1838_v7  ;;  %v1876_v14 = vpop.f32.mrb[67].mxu1 }
 0xa18   : > { %3400 = vtanh.f32 %v1874_v11  ;;  %v1877_v15 = vadd.f32 %v1876_v14, %v1838_v7 }
 0xa19   : > { %3402 = vtanh.f32 %v1885_v13 }
 0xa1a   : > { %3404 = vtanh.f32 %v1877_v15 }
 0xa1c   : > { %v3060_v17 = vpop.f32.mrb[68].mxu1 }
 0xa1d   : > { %v1898_v18 = vadd.f32 %v3060_v17, %v1838_v7  ;;  %v1889_v19 = vpop.f32.mrb[69].mxu1 }
 0xa1e   : > { %v1890_v20 = vadd.f32 %v1889_v19, %v1838_v7  ;;  %v3061_v21 = vpop.f32.mrb[70].mxu1 }
 0xa1f   : > { %3406 = vtanh.f32 %v1898_v18  ;;  %v1901_v22 = vadd.f32 %v3061_v21, %v1838_v7  ;;  %v1892_v23 = vpop.f32.mrb[71].mxu1 }
 0xa20   : > { %3408 = vtanh.f32 %v1890_v20  ;;  %v1893_v24 = vadd.f32 %v1892_v23, %v1838_v7 }
 0xa21   : > { %v3399_v25 = vpop.eup %3398  ;;  %3410 = vtanh.f32 %v1901_v22 }
 0xa22   : > { %v3401_v26 = vpop.eup %3400  ;;  %3412 = vtanh.f32 %v1893_v24 }
 0xa23   : > { %v3403_v27 = vpop.eup %3402 }
 0xa24   : > { %v3405_v28 = vpop.eup %3404  ;;  %v3064_v29 = vpop.f32.mrb[72].mxu1  ;;  %v1953_v30 = vpack.c.bf16 %v3403_v27, %v3399_v25 }
 0xa25   : > { %v1914_v44 = vadd.f32 %v3064_v29, %v1838_v7  ;;  %v1905_v45 = vpop.f32.mrb[73].mxu1  ;;  %v1952_v46 = vpack.c.bf16 %v3405_v28, %v3401_v26 }
 0xa26   : > { %v1906_v47 = vadd.f32 %v1905_v45, %v1838_v7  ;;  %v3065_v48 = vpop.f32.mrb[74].mxu1 }
 0xa27   : > { %3414 = vtanh.f32 %v1914_v44  ;;  %v1917_v16 = vadd.f32 %v3065_v48, %v1838_v7  ;;  %v1908_v49 = vpop.f32.mrb[75].mxu1  ;;  %3086 = vmatprep.mubr.bf16.mxu0 %v1952_v46 }
 0xa28   : > { %3416 = vtanh.f32 %v1906_v47  ;;  %v1909_v50 = vadd.f32 %v1908_v49, %v1838_v7  ;;  %3087 = vmatmul.mubr.bf16.vlgmr.msra.gmra.mrb[80].mxu0 %v1953_v30  ;;  %v3700_v47 = vmov 0.0  }
 0xa29   : > { %v3407_v31 = vpop.eup %3406  ;;  %3418 = vtanh.f32 %v1917_v16  ;;  %3134 = vmatprep.subr.bf16.mxu0 %v3700_v47 }
 0xa2a   : > { %v3409_v32 = vpop.eup %3408  ;;  %3420 = vtanh.f32 %v1909_v50 }
 0xa2b   : > { %v3411_v34 = vpop.eup %3410 }
 0xa2c   : > { %v3413_v35 = vpop.eup %3412  ;;  %v3068_v36 = vpop.f32.mrb[76].mxu1  ;;  %v1955_v33 = vpack.c.bf16 %v3411_v34, %v3407_v31 }
 0xa2d   : > { %v1930_v37 = vadd.f32 %v3068_v36, %v1838_v7  ;;  %v1921_v38 = vpop.f32.mrb[77].mxu1  ;;  %v1954_v39 = vpack.c.bf16 %v3413_v35, %v3409_v32 }
 0xa2e   : > { %v1922_v40 = vadd.f32 %v1921_v38, %v1838_v7  ;;  %v3069_v41 = vpop.f32.mrb[78].mxu1 }
 0xa2f   : > { %3422 = vtanh.f32 %v1930_v37  ;;  %v1933_v59 = vadd.f32 %v3069_v41, %v1838_v7  ;;  %v1924_v42 = vpop.f32.mrb[79].mxu1  ;;  %3090 = vmatprep.mubr.bf16.mxu0 %v1954_v39 }
 0xa30   : > { %3424 = vtanh.f32 %v1922_v40  ;;  %v1925_v43 = vadd.f32 %v1924_v42, %v1838_v7  ;;  %3091 = vmatmul.mubr.bf16.gmra.mrb[84].mxu0 %v1955_v33 }
 0xa31   : > { %v3415_v51 = vpop.eup %3414  ;;  %3426 = vtanh.f32 %v1933_v59 }
 0xa32   : > { %v3417_v52 = vpop.eup %3416  ;;  %3428 = vtanh.f32 %v1925_v43 }
 0xa33   : > { %v3419_v53 = vpop.eup %3418 }
 0xa34   : > { %v3421_v60 = vpop.eup %3420  ;;  %v1957_v0 = vpack.c.bf16 %v3419_v53, %v3415_v51 }
 0xa35   : > { %v1956_v1 = vpack.c.bf16 %v3421_v60, %v3417_v52 }
 0xa37   : > { %3094 = vmatprep.mubr.bf16.mxu0 %v1956_v1 }
 0xa38   : > { %3095 = vmatmul.mubr.bf16.gmra.mrb[88].mxu0 %v1957_v0 }
 0xa39   : > { %v3423_v2 = vpop.eup %3422 }
 0xa3a   : > { %v3425_v3 = vpop.eup %3424 }
 0xa3b   : > { %v3427_v4 = vpop.eup %3426 }
 0xa3c   : > { %v3429_v5 = vpop.eup %3428  ;;  %v1959_v8 = vpack.c.bf16 %v3427_v4, %v3423_v2 }
 0xa3d   : > { %v1958_v9 = vpack.c.bf16 %v3429_v5, %v3425_v3 }
 0xa3f   : > { %3098 = vmatprep.mubr.bf16.mxu0 %v1958_v9 }
 0xa40   : > { %3099 = vmatmul.mubr.bf16.gmra.mrb[92].mxu0 %v1959_v8 }
 0xa41   : > { %3150 = vmatprep.mubr.msk.bf16.mxu0 %vm3701_vm0, %v3700_v47 }
 0xafb   : > { %v3088_v7 = vpop.f32.mrb[80].mxu0 }
 0xafc   : > { %v2058_v10 = vpop.f32.mrb[81].mxu0 }
 0xafd   : > { %v3089_v11 = vpop.f32.mrb[82].mxu0 }
 0xafe   : > { %v2122_v12 = vpack.c.bf16 %v3089_v11, %v3088_v7  ;;  %v2061_v13 = vpop.f32.mrb[83].mxu0 }
 0xaff   : > { %v2121_v14 = vpack.c.bf16 %v2061_v13, %v2058_v10 }
 0xb01   : > { %3102 = vmatprep.subr.bf16.mxu1 %v2121_v14 }
 0xb02   : > { %3103 = vmatpush3.bf16.msra.mxu1 %v2121_v14 }
 0xb03   : > { %v3092_v15 = vpop.f32.mrb[84].mxu0  ;;  %3104 = vmatprep.subr.bf16.mxu1 %v2122_v12 }
 0xb04   : > { %v2074_v17 = vpop.f32.mrb[85].mxu0 }
 0xb05   : > { %v3093_v18 = vpop.f32.mrb[86].mxu0 }
 0xb06   : > { %v2124_v19 = vpack.c.bf16 %v3093_v18, %v3092_v15  ;;  %v2077_v20 = vpop.f32.mrb[87].mxu0  ;;  %3105 = vmatpush3.bf16.msra.mxu1 %v2122_v12 }
 0xb07   : > { %v2123_v21 = vpack.c.bf16 %v2077_v20, %v2074_v17 }
 0xb09   : > { %3106 = vmatprep.subr.bf16.mxu1 %v2123_v21 }
 0xb0a   : > { %3107 = vmatpush3.bf16.msra.mxu1 %v2123_v21 }
 0xb0b   : > { %v3096_v22 = vpop.f32.mrb[88].mxu0  ;;  %3108 = vmatprep.subr.bf16.mxu1 %v2124_v19 }
 0xb0c   : > { %v2090_v23 = vpop.f32.mrb[89].mxu0 }
 0xb0d   : > { %v3097_v24 = vpop.f32.mrb[90].mxu0 }
 0xb0e   : > { %v2126_v25 = vpack.c.bf16 %v3097_v24, %v3096_v22  ;;  %v2093_v26 = vpop.f32.mrb[91].mxu0  ;;  %3109 = vmatpush3.bf16.msra.mxu1 %v2124_v19 }
 0xb0f   : > { %v2125_v27 = vpack.c.bf16 %v2093_v26, %v2090_v23 }
 0xb11   : > { %3110 = vmatprep.subr.bf16.mxu1 %v2125_v27 }
 0xb12   : > { %3111 = vmatpush3.bf16.msra.mxu1 %v2125_v27 }
 0xb13   : > { %v3100_v28 = vpop.f32.mrb[92].mxu0  ;;  %3112 = vmatprep.subr.bf16.mxu1 %v2126_v25 }
 0xb14   : > { %v2106_v29 = vpop.f32.mrb[93].mxu0 }
 0xb15   : > { %v3101_v30 = vpop.f32.mrb[94].mxu0 }
 0xb16   : > { %v2128_v44 = vpack.c.bf16 %v3101_v30, %v3100_v28  ;;  %v2109_v45 = vpop.f32.mrb[95].mxu0  ;;  %3113 = vmatpush3.bf16.msra.mxu1 %v2126_v25 }
 0xb17   : > { %v2127_v46 = vpack.c.bf16 %v2109_v45, %v2106_v29  ;;  %v3301_v29 = vld [vmem:[%s4007_s7] sm:$0xff]  }
 0xb19   : > { %3114 = vmatprep.subr.bf16.mxu1 %v2127_v46 }
 0xb1a   : > { %3115 = vmatpush3.bf16.msra.mxu1 %v2127_v46 }
 0xb1b   : > { %3116 = vmatprep.subr.bf16.mxu1 %v2128_v44 }
 0xb1e   : > { %3117 = vmatpush3.bf16.msra.mxu1 %v2128_v44 }
 0xb21   : > { %3119 = vmatmul.mubr.bf16.vlgmr.msra.gmra.mrb[80].mxu1 %v4100_v54  ;;  %v2131_v54 = vsub.s32 5, %v4060_v57 }
 0xb22   : > { %3122 = vmatprep.mubr.bf16.mxu1 %v4104_v55 }
 0xb23   : > { %v4146_v55 = vrot.slane %v4132_v6, %v2131_v54 }
 0xb29   : > { %3123 = vmatmul.mubr.bf16.gmra.mrb[84].mxu1 %v4108_v56 }
 0xb2a   : > { %3126 = vmatprep.mubr.bf16.mxu1 %v4112_v58 }
 0xb31   : > { %3127 = vmatmul.mubr.bf16.gmra.mrb[88].mxu1 %v4116_v61 }
 0xb32   : > { %3130 = vmatprep.mubr.bf16.mxu1 %v4120_v62 }
 0xb39   : > { %3131 = vmatmul.mubr.bf16.gmra.mrb[92].mxu1 %v4124_v63 }
 0xbf4   : > { %v3120_v56 = vpop.f32.mrb[80].mxu1 }
 0xbf5   : > { %v2176_v58 = vadd.f32 %v3120_v56, %v4146_v55  ;;  %v2167_v48 = vpop.f32.mrb[81].mxu1 }
 0xbf6   : > { %v2168_v61 = vadd.f32 %v2167_v48, %v4146_v55  ;;  %v3121_v62 = vpop.f32.mrb[82].mxu1 }
 0xbf7   : > { %3430 = vtanh.f32 %v2176_v58  ;;  %v2179_v63 = vadd.f32 %v3121_v62, %v4146_v55  ;;  %v2170_v16 = vpop.f32.mrb[83].mxu1 }
 0xbf8   : > { %3432 = vtanh.f32 %v2168_v61  ;;  %v2171_v49 = vadd.f32 %v2170_v16, %v4146_v55 }
 0xbf9   : > { %3434 = vtanh.f32 %v2179_v63 }
 0xbfa   : > { %3436 = vtanh.f32 %v2171_v49 }
 0xbfc   : > { %v3124_v57 = vpop.f32.mrb[84].mxu1 }
 0xbfd   : > { %v2192_v6 = vadd.f32 %v3124_v57, %v4146_v55  ;;  %v2183_v50 = vpop.f32.mrb[85].mxu1 }
 0xbfe   : > { %v2184_v31 = vadd.f32 %v2183_v50, %v4146_v55  ;;  %v3125_v32 = vpop.f32.mrb[86].mxu1 }
 0xbff   : > { %3438 = vtanh.f32 %v2192_v6  ;;  %v2195_v34 = vadd.f32 %v3125_v32, %v4146_v55  ;;  %v2186_v35 = vpop.f32.mrb[87].mxu1 }
 0xc00   : > { %3440 = vtanh.f32 %v2184_v31  ;;  %v2187_v36 = vadd.f32 %v2186_v35, %v4146_v55 }
 0xc01   : > { %v3431_v33 = vpop.eup %3430  ;;  %3442 = vtanh.f32 %v2195_v34 }
 0xc02   : > { %v3433_v37 = vpop.eup %3432  ;;  %3444 = vtanh.f32 %v2187_v36 }
 0xc03   : > { %v3435_v38 = vpop.eup %3434 }
 0xc04   : > { %v3437_v39 = vpop.eup %3436  ;;  %v3128_v40 = vpop.f32.mrb[88].mxu1  ;;  %v2247_v41 = vpack.c.bf16 %v3435_v38, %v3431_v33 }
 0xc05   : > { %v2208_v59 = vadd.f32 %v3128_v40, %v4146_v55  ;;  %v2199_v42 = vpop.f32.mrb[89].mxu1  ;;  %v2246_v43 = vpack.c.bf16 %v3437_v39, %v3433_v37 }
 0xc06   : > { %v2200_v51 = vadd.f32 %v2199_v42, %v4146_v55  ;;  %v3129_v52 = vpop.f32.mrb[90].mxu1 }
 0xc07   : > { %3446 = vtanh.f32 %v2208_v59  ;;  %v2211_v53 = vadd.f32 %v3129_v52, %v4146_v55  ;;  %v2202_v60 = vpop.f32.mrb[91].mxu1  ;;  %3135 = vmatpush3.bf16.msra.mxu0 %v2246_v43 }
 0xc08   : > { %3448 = vtanh.f32 %v2200_v51  ;;  %v2203_v0 = vadd.f32 %v2202_v60, %v4146_v55  ;;  %3136 = vmatprep.subr.bf16.mxu0 %v3700_v47 }
 0xc09   : > { %v3439_v1 = vpop.eup %3438  ;;  %3450 = vtanh.f32 %v2211_v53 }
 0xc0a   : > { %v3441_v2 = vpop.eup %3440  ;;  %3452 = vtanh.f32 %v2203_v0 }
 0xc0b   : > { %v3443_v3 = vpop.eup %3442  ;;  %3137 = vmatpush3.bf16.msra.mxu0 %v2247_v41 }
 0xc0c   : > { %v3445_v4 = vpop.eup %3444  ;;  %v3132_v5 = vpop.f32.mrb[92].mxu1  ;;  %3138 = vmatprep.subr.bf16.mxu0 %v3700_v47  ;;  %v2249_v8 = vpack.c.bf16 %v3443_v3, %v3439_v1 }
 0xc0d   : > { %v2224_v9 = vadd.f32 %v3132_v5, %v4146_v55  ;;  %v2215_v7 = vpop.f32.mrb[93].mxu1  ;;  %v2248_v10 = vpack.c.bf16 %v3445_v4, %v3441_v2 }
 0xc0e   : > { %v2216_v11 = vadd.f32 %v2215_v7, %v4146_v55  ;;  %v3133_v12 = vpop.f32.mrb[94].mxu1 }
 0xc0f   : > { %3454 = vtanh.f32 %v2224_v9  ;;  %v2227_v13 = vadd.f32 %v3133_v12, %v4146_v55  ;;  %v2218_v14 = vpop.f32.mrb[95].mxu1  ;;  %3139 = vmatpush3.bf16.msra.mxu0 %v2248_v10 }
 0xc10   : > { %3456 = vtanh.f32 %v2216_v11  ;;  %v2219_v15 = vadd.f32 %v2218_v14, %v4146_v55  ;;  %3140 = vmatprep.subr.bf16.mxu0 %v3700_v47 }
 0xc11   : > { %v3447_v17 = vpop.eup %3446  ;;  %3458 = vtanh.f32 %v2227_v13 }
 0xc12   : > { %v3449_v18 = vpop.eup %3448  ;;  %3460 = vtanh.f32 %v2219_v15 }
 0xc13   : > { %v3451_v19 = vpop.eup %3450  ;;  %3141 = vmatpush3.bf16.msra.mxu0 %v2249_v8 }
 0xc14   : > { %v3453_v20 = vpop.eup %3452  ;;  %3142 = vmatprep.subr.bf16.mxu0 %v3700_v47  ;;  %v2251_v21 = vpack.c.bf16 %v3451_v19, %v3447_v17 }
 0xc15   : > { %v2250_v22 = vpack.c.bf16 %v3453_v20, %v3449_v18 }
 0xc17   : > { %3143 = vmatpush3.bf16.msra.mxu0 %v2250_v22 }
 0xc18   : > { %3144 = vmatprep.subr.bf16.mxu0 %v3700_v47 }
 0xc19   : > { %v3455_v23 = vpop.eup %3454 }
 0xc1a   : > { %v3457_v24 = vpop.eup %3456 }
 0xc1b   : > { %v3459_v25 = vpop.eup %3458  ;;  %3145 = vmatpush3.bf16.msra.mxu0 %v2251_v21 }
 0xc1c   : > { %v3461_v26 = vpop.eup %3460  ;;  %3146 = vmatprep.subr.bf16.mxu0 %v3700_v47  ;;  %v2253_v27 = vpack.c.bf16 %v3459_v25, %v3455_v23 }
 0xc1d   : > { %v2252_v28 = vpack.c.bf16 %v3461_v26, %v3457_v24 }
 0xc1f   : > { %3147 = vmatpush3.bf16.msra.mxu0 %v2252_v28 }
 0xc20   : > { %3148 = vmatprep.subr.bf16.mxu0 %v3700_v47 }
 0xc23   : > { %3149 = vmatpush3.bf16.msra.mxu0 %v2253_v27 }
 0xc26   : > { %3151 = vmatmul.mubr.bf16.vlgmr.msra.gmra.mrb[96].mxu0 %v3301_v29 }
 0xcf9   : > { %v2296_v30 = vpop.f32.mrb[96].mxu0 }
 0xcfa   : > { %2303 = vst [vmem:[%s375_s16] sm:$0xff] %v2296_v30  ;;  %v3152_v44 = vpop.f32.mrb[97].mxu0 }
 0xcfb   : > { %v2299_v45 = vpop.f32.mrb[98].mxu0 }
 0xcfc   : > { %2304 = vst [vmem:[%s375_s16 + $0x8] sm:$0xff] %v2299_v45  ;;  %v3153_v46 = vpop.f32.mrb[99].mxu0 }
 0xcfd   : > { %3630 = shalt.err (!%p3627_p1)
}
 0xcfe   : > { %s3631_s11 = scalar_lea.hbm %s4179_s23, 256  ;;  %s3635_s7 = scalar_lea.hbm %s4229_s6, 512 }
 0xcff   : > { %p3632_p0 = scmp.ne.s32.totalorder %s4179_s23, %s3631_s11  ;;  %p3636_p4 = scmp.lt.u32.totalorder %s4179_s23, %s4229_s6 }
 0xd00   : > { %p3637_p13 = scmp.lt.u32.totalorder %s3635_s7, %s3631_s11  ;;  %p3639_p3 = scmp.lt.u32.totalorder %s3631_s11, %s4179_s23 }
 0xd01   : > { %p3633_p5 = pnand %p3632_p0, %p4275_p7 }
 0xd02   : > { %p3638_p12 = por %p3637_p13, %p3636_p4 }
 0xd03   : > { %p3634_p11 = pneg %p3633_p5 }
 0xd04   : > { %p3640_p2 = por %p3639_p3, %p3638_p12 }
 0xd06   : > { %p3641_p6 = pnand %p3640_p2, %p3634_p11 }
 0xd08   : > { %3644 = shalt.err (!%p3641_p6)
}
 0xd09   : > { %s3703_s3 = smov 128   ;;  %s3704_s13 = smov 8  }
 0xd0a   : > { %3168 = dma.vmem_to_hbm [thread:$0]  (%p4275_p7), %s4174_s27, 256, %s4179_s23, %s2306_s12, %s3703_s3, %s3703_s3, %s3704_s13  }
 0xd0b PF: > { %s4276_s28 = sld [smem:[#allocation19_spill]]  ;;  %s2334_s29 = sand.u32 1, %s3679_s21  }
 0xd0c   : > { %p4278_p9 = scmp.ge.s32.totalorder %s3691_s24, 2  ;;  %s2335_s16 = scalar_lea.sflag [#allocation4], %s2334_s29 }
 0xd11   : > { %p4277_p8 = scmp.ne.s32.totalorder %s4276_s28, 0 }
 0xd13   : > { %p3188_p10 = pnand %p4278_p9, %p4277_p8 }
 0xd15   : > { %3674 = dma.done.wait (!%p3188_p10), %s2335_s16, 256  }
 0xd16   : > { %3676 = vsyncadd (!%p3188_p10), %s2335_s16, 4294967040  ;;  %s4279_s24 = sld [smem:[#allocation17_spill]]  ;;  %s4280_s19 = sld [smem:[#allocation16_spill]] }
 0xd17   : > { %s4281_s23 = sld [smem:[#allocation18_spill]]  ;;  %s4282_s21 = smov %s3683_s22 }
 0xd1c   : > { %p23_p1 = scmp.ge.s32.totalorder %s4279_s24, 4   ;;  %s4283_s22 = smov %s4280_s19 }
 0xd1e   :  { %25 = sbr.rel (!%p23_p1) target bundleno = 11 (0xb), region = 121 }
 0xd25   :  { %2340 = vsyncpa [#allocation3], 1 }
 0xd26   :  { %2342 = vsyncpa [#allocation3 + $0x1], 1 }
 0xd27   :  { %2343 = vsyncpa [#allocation6], 1 }
 0xd28   :  { %2345 = vsyncpa [#allocation6 + $0x1], 1 }
 0xd29   :  { %2346 = vsyncpa [#allocation9], 1 }
 0xd2a   :  { %2347 = vsyncpa [#allocation4], 1 }
 0xd2b   :  { %2349 = vsyncpa [#allocation4 + $0x1], 1 }

</bundles_post_ra>
